<compile_context>
chip_gen: v7x
topology: tpu7x:2x2x1
jax: 0.10.0
libtpu: 0.0.40
codegen_flags: <defaults>
</compile_context>

<pallas_src>
import math

import numpy as np
import jax
import jax.numpy as jnp
from jax import lax
from jax.experimental import pallas as pl
from jax.experimental.pallas import tpu as pltpu

_NEG_SLOPE = 0.01        # nn.LeakyReLU default
_IN_EPS = 1e-5           # nn.InstanceNorm2d default eps


# --------------------------------------------------------------------------
# Fused TimeEmbeddingConvBlock kernel (one batch sample per grid step)
# --------------------------------------------------------------------------
def _build_te_block_kernel(*, input_kinds, input_channels, H, W, Cout, upsample):
    """refs layout (in order):
         x_refs[k]  : (1, Ck, hs*wp_in) wide activation  OR  (1, Ck, H, W) NCHW skip
         [u_ref]    : (hs*wp_in, H*Wp) 0/1 upsample matrix (only if upsample)
         w_ref      : (9, Cout, Cin)   per-tap conv weights, bf16
         t_ref      : (1, Cout, 1)     hoisted Linear(LeakyReLU(t_emb)) + bias
         mask_ref   : (1, H*Wp)        1.0 on valid columns, 0.0 on junk columns
         o_ref      : (1, Cout, H*Wp)  wide output slab
         pad_ref    : (Cin, (H+3)*Wp)  flat zero-padded image scratch, bf16
    """
    Wp = W + 2
    N = H * Wp                      # wide slab length (incl. 2 junk cols/row)
    Lpad = (H + 3) * Wp             # padded image + slack for tap-slab overrun
    Cin = sum(input_channels)
    n_in = len(input_kinds)
    taps = [(ky, kx) for ky in range(3) for kx in range(3)]
    inv_n = 1.0 / float(H * W)
    head = Wp + 1                   # [0, head): top pad row + left pad of row 1
    tail = (H + 1) * Wp + 1         # [tail, Lpad): bottom pad rows + slack

    def kernel(*refs):
        x_refs = refs[:n_in]
        idx = n_in
        u_ref = None
        if upsample:
            u_ref = refs[idx]
            idx += 1
        w_ref, t_ref, mask_ref, o_ref, pad_ref = refs[idx:idx + 5]

        # ---- zero only the small never-overwritten border regions ----------
        pad_ref[:, 0:head] = jnp.zeros((Cin, head), jnp.bfloat16)
        pad_ref[:, tail:Lpad] = jnp.zeros((Cin, Lpad - tail), jnp.bfloat16)

        # ---- fill the padded interior slab [head, head + N) ----------------
        # (channel-concat of the skip connection is fused via the c0 offsets)
        c0 = 0
        for x_ref, kind, C in zip(x_refs, input_kinds, input_channels):
            if kind == "wide":
                xw = x_ref[0].astype(jnp.bfloat16)          # (C, N_in)
                if upsample:
                    # nearest-2x upsample + zero padding as one 0/1 MXU matmul
                    xw = jnp.dot(xw, u_ref[...],
                                 preferred_element_type=jnp.float32
                                 ).astype(jnp.bfloat16)     # (C, N)
                # producer zeroed the junk columns -> this single contiguous
                # store also writes the left/right padding columns correctly.
                pad_ref[c0:c0 + C, head:head + N] = xw
            else:  # "nchw" skip connection: (C, H, W), written row by row
                xs = x_ref[0].astype(jnp.bfloat16)          # (C, H, W)
                xz = jnp.concatenate(
                    [xs, jnp.zeros((C, H, 2), jnp.bfloat16)], axis=2)  # (C,H,Wp)
                for r in range(H):
                    off = (r + 1) * Wp + 1
                    pad_ref[c0:c0 + C, off:off + Wp] = xz[:, r, :]
            c0 += C

        # ---- 3x3 'same' conv: 9 accumulating MXU matmuls --------------------
        # (conv bias omitted: a per-channel constant is exactly cancelled by
        #  the InstanceNorm mean subtraction below)
        acc = jnp.dot(w_ref[0], pad_ref[:, 0:N],
                      preferred_element_type=jnp.float32)            # (Cout, N)
        for t in range(1, 9):
            ky, kx = taps[t]
            off = ky * Wp + kx
            acc = acc + jnp.dot(w_ref[t], pad_ref[:, off:off + N],
                                preferred_element_type=jnp.float32)

        # ---- InstanceNorm2d: one-pass masked statistics (f32) ---------------
        mask = mask_ref[...]                                  # (1, N)
        am = acc * mask
        mean = jnp.sum(am, axis=1, keepdims=True) * inv_n                # (Cout,1)
        var = jnp.sum(am * acc, axis=1, keepdims=True) * inv_n - mean * mean
        var = jnp.maximum(var, 0.0)

        # ---- + hoisted time-embedding projection, LeakyReLU ------------------
        h = (acc - mean) * lax.rsqrt(var + _IN_EPS) + t_ref[0]
        h = jnp.where(h > 0, h, _NEG_SLOPE * h)
        # zero the junk columns so the consumer's single-store pad-fill works
        o_ref[0] = (h * mask).astype(o_ref.dtype)

    return kernel


# --------------------------------------------------------------------------
# Upsample-as-matmul selection matrix (built once per block config, in numpy)
# --------------------------------------------------------------------------
def _upsample_matrix(hs, ws):
    """(hs*(ws+2), 2hs*(2ws+2)) 0/1 matrix mapping the wide low-res slab onto
    the padded-interior slab of the nearest-2x upsampled image (zero rows at
    padding-column positions)."""
    wp_in = ws + 2
    H, W = 2 * hs, 2 * ws
    Wp = W + 2
    p = np.arange(H * Wp)
    f = p + Wp + 1                               # flat index in padded image
    R, C = f // Wp, f % Wp
    interior = (R >= 1) & (R <= H) & (C >= 1) & (C <= W)
    src_r = np.clip((R - 1) // 2, 0, hs - 1)
    src_c = np.clip((C - 1) // 2, 0, ws - 1)
    q = src_r * wp_in + src_c
    U = np.zeros((hs * wp_in, H * Wp), np.float32)
    U[q[interior], p[interior]] = 1.0
    return jnp.asarray(U, dtype=jnp.bfloat16)


# --------------------------------------------------------------------------
# One TimeEmbeddingConvBlock
# --------------------------------------------------------------------------
def te_conv_block(x_list, t_emb, params, in_hw, *,
                  upsample=False, out_dtype=jnp.bfloat16):
    """x_list entries are either 4-D NCHW (B,C,H,W) skip connections or 3-D
    wide (B, C, H*(W+2)) activations produced by a previous block (the
    channel concat torch.cat(dim=1) is fused in-kernel via channel offsets).
    Returns the wide (B, Cout, Hout*(Wout+2)) activation."""
    w, _conv_bias_unused, lw, lb = params      # conv bias cancelled by InstanceNorm
    hs, ws = in_hw
    H, W = (2 * hs, 2 * ws) if upsample else (hs, ws)
    Wp = W + 2
    N = H * Wp
    B = x_list[0].shape[0]

    input_kinds, input_channels = [], []
    for x in x_list:
        if x.ndim == 4:
            assert not upsample
            assert x.shape[2] == hs and x.shape[3] == ws
            input_kinds.append("nchw")
        else:
            assert x.shape[2] == hs * (ws + 2)
            input_kinds.append("wide")
        input_channels.append(int(x.shape[1]))
    if upsample:
        assert len(x_list) == 1 and input_kinds[0] == "wide"
    Cin = sum(input_channels)
    Cout = int(w.shape[-1])
    assert w.shape == (3, 3, Cin, Cout)

    # conv weight (3,3,Cin,Cout) -> per-tap (9, Cout, Cin), bf16 for the MXU
    w_taps = jnp.transpose(w.reshape(9, Cin, Cout), (0, 2, 1)).astype(jnp.bfloat16)

    # hoisted time-embedding path: Linear(LeakyReLU(t_emb)) + bias -> (B,Cout,1)
    t_act = jnp.where(t_emb > 0, t_emb, _NEG_SLOPE * t_emb)
    t_proj = (t_act @ lw + lb).astype(jnp.float32).reshape(B, Cout, 1)

    # validity mask over the wide columns (junk columns excluded)
    mask = jnp.asarray(
        ((np.arange(N) % Wp) < W).astype(np.float32)).reshape(1, N)

    operands, in_specs = [], []
    for x in x_list:
        operands.append(x)
        if x.ndim == 4:
            in_specs.append(pl.BlockSpec((1,) + tuple(x.shape[1:]),
                                         lambda b: (b, 0, 0, 0)))
        else:
            in_specs.append(pl.BlockSpec((1,) + tuple(x.shape[1:]),
                                         lambda b: (b, 0, 0)))
    if upsample:
        U = _upsample_matrix(hs, ws)
        operands.append(U)
        in_specs.append(pl.BlockSpec(tuple(U.shape), lambda b: (0, 0)))
    operands += [w_taps, t_proj, mask]
    in_specs += [
        pl.BlockSpec((9, Cout, Cin), lambda b: (0, 0, 0)),
        pl.BlockSpec((1, Cout, 1), lambda b: (b, 0, 0)),
        pl.BlockSpec((1, N), lambda b: (0, 0)),
    ]

    kernel = _build_te_block_kernel(
        input_kinds=tuple(input_kinds), input_channels=tuple(input_channels),
        H=H, W=W, Cout=Cout, upsample=upsample)

    # rough working-set estimate -> explicit scoped-VMEM limit with headroom
    blk_bytes = sum(int(np.prod(x.shape[1:])) * x.dtype.itemsize for x in x_list)
    blk_bytes += int(np.prod(w_taps.shape)) * 2 + N * 4 + Cout * 4
    blk_bytes += Cout * N * jnp.dtype(out_dtype).itemsize
    if upsample:
        blk_bytes += hs * (ws + 2) * N * 2
    scratch_bytes = Cin * (H + 3) * Wp * 2
    vmem_limit = int(min(112 * 2 ** 20,
                         max(32 * 2 ** 20,
                             2 * blk_bytes + scratch_bytes + (8 << 20))))

    flops = B * 2 * 9 * Cin * Cout * N
    if upsample:
        flops += B * 2 * Cin * hs * (ws + 2) * N
    cost = pl.CostEstimate(flops=int(flops),
                           transcendentals=int(B * Cout),
                           bytes_accessed=int(B * blk_bytes))

    out = pl.pallas_call(
        kernel,
        out_shape=jax.ShapeDtypeStruct((B, Cout, N), out_dtype),
        grid=(B,),
        in_specs=in_specs,
        out_specs=pl.BlockSpec((1, Cout, N), lambda b: (b, 0, 0)),
        scratch_shapes=[pltpu.VMEM((Cin, (H + 3) * Wp), jnp.bfloat16)],
        compiler_params=pltpu.CompilerParams(
            dimension_semantics=("parallel",),
            vmem_limit_bytes=vmem_limit),
        cost_estimate=cost,
    )(*operands)
    return out


# --------------------------------------------------------------------------
# Parameter construction (deterministic, mirrors the PyTorch __init__ shapes)
# --------------------------------------------------------------------------
def init_conv_block_params(key, cin, cout, tin):
    k1, k2, k3, k4 = jax.random.split(key, 4)
    s_conv = 1.0 / math.sqrt(cin * 9)
    w = jax.random.uniform(k1, (3, 3, cin, cout), jnp.float32, -s_conv, s_conv)
    # conv bias kept for parameter-shape parity with nn.Conv2d, but it is
    # mathematically cancelled by InstanceNorm's mean subtraction -> unused.
    b = jax.random.uniform(k2, (cout,), jnp.float32, -s_conv, s_conv)
    s_lin = 1.0 / math.sqrt(tin)
    lw = jax.random.uniform(k3, (tin, cout), jnp.float32, -s_lin, s_lin)
    lb = jax.random.uniform(k4, (cout,), jnp.float32, -s_lin, s_lin)
    return (w, b, lw, lb)


def init_decoder_params(key, features_list_reversed, time_embedding_dim):
    params = []
    num_stages = len(features_list_reversed)
    stage_keys = jax.random.split(key, num_stages)
    for i in range(num_stages):
        fi = features_list_reversed[i]
        cin1 = fi if i == 0 else fi * 2
        ks = jax.random.split(stage_keys[i], 3)
        stage = {
            "block0": init_conv_block_params(ks[0], cin1, fi, time_embedding_dim),
            "block1": init_conv_block_params(ks[1], fi, fi, time_embedding_dim),
        }
        if i < num_stages - 1:
            stage["block_up"] = init_conv_block_params(
                ks[2], fi, features_list_reversed[i + 1], time_embedding_dim)
        params.append(stage)
    return params


# --------------------------------------------------------------------------
# Decoder forward (matches TimeEmbeddingDecoder.forward; NCHW in, NCHW out)
# --------------------------------------------------------------------------
def time_embedding_decoder(x_skip_connections_reversed_nchw, t_emb, params):
    skips = x_skip_connections_reversed_nchw
    B = skips[0].shape[0]
    h, w_sp = int(skips[0].shape[2]), int(skips[0].shape[3])
    y = skips[0]                                   # consumed as NCHW directly
    num_stages = len(params)
    for i, stage in enumerate(params):
        last_stage = (i == num_stages - 1)
        if i > 0:
            x_list = [skips[i], y]                 # torch.cat((skip, y), dim=1)
        else:
            x_list = [y]
        y = te_conv_block(x_list, t_emb, stage["block0"], (h, w_sp))
        y = te_conv_block([y], t_emb, stage["block1"], (h, w_sp),
                          out_dtype=jnp.float32 if last_stage else jnp.bfloat16)
        if not last_stage:
            # nn.Upsample(scale_factor=2, mode='nearest') fused into block_up
            y = te_conv_block([y], t_emb, stage["block_up"], (h, w_sp),
                              upsample=True)
            h, w_sp = 2 * h, 2 * w_sp
    # back to NCHW: drop the 2 zero junk columns per row (free reshape + slice)
    cf = int(y.shape[1])
    return y.reshape(B, cf, h, w_sp + 2)[:, :, :, :w_sp]


if __name__ == "__main__":
    key = jax.random.PRNGKey(0)
    k_p, k_s0, k_s1, k_t = jax.random.split(key, 4)

    features_list_reversed = [16, 8]
    time_embedding_dim = 32
    B, H0, W0 = 2, 16, 16

    params = init_decoder_params(k_p, features_list_reversed, time_embedding_dim)

    # skip connections reversed: deepest (smallest spatial) first, NCHW.
    skips = [
        jax.random.normal(k_s0, (B, features_list_reversed[0], H0, W0),
                          jnp.float32),
        jax.random.normal(k_s1, (B, features_list_reversed[1], 2 * H0, 2 * W0),
                          jnp.float32),
    ]
    t_emb = jax.random.normal(k_t, (B, time_embedding_dim), jnp.float32)

    out = time_embedding_decoder(skips, t_emb, params)
    out = jax.block_until_ready(out)

    assert out.shape == (B, features_list_reversed[-1], 2 * H0, 2 * W0), out.shape
    assert bool(jnp.all(jnp.isfinite(out)))
    print("KERNEL_OK")
</pallas_src>

<mosaic_0001>
module attributes {stable_mosaic.version = 11 : i64} {
  func.func @kernel(%arg0: i32, %arg1: memref<1x16x16x16xf32, #tpu.memory_space<vmem>>, %arg2: memref<9x16x16xbf16, #tpu.memory_space<vmem>>, %arg3: memref<1x16x1xf32, #tpu.memory_space<vmem>>, %arg4: memref<1x288xf32, #tpu.memory_space<vmem>>, %arg5: memref<1x16x288xbf16, #tpu.memory_space<vmem>>, %arg6: memref<16x342xbf16, #tpu.memory_space<vmem>>) attributes {dimension_semantics = [#tpu.dimension_semantics<parallel>], iteration_bounds = array<i64: 2>, scalar_prefetch = 0 : i64, scratch_operands = 1 : i64, tpu.core_type = #tpu.core_type<tc>, window_params = [{transform_indices = @transform_0, window_bounds = array<i64: 1, 16, 16, 16>}, {pipeline_mode = #tpu.pipeline_mode<synchronous>, transform_indices = @transform_1, window_bounds = array<i64: 9, 16, 16>}, {transform_indices = @transform_2, window_bounds = array<i64: 1, 16, 1>}, {pipeline_mode = #tpu.pipeline_mode<synchronous>, transform_indices = @transform_3, window_bounds = array<i64: 1, 288>}, {transform_indices = @transform_4, window_bounds = array<i64: 1, 16, 288>}]} {
    %cst = arith.constant 0.000000e+00 : bf16
    %0 = vector.broadcast %cst : bf16 to vector<16x19xbf16>
    %c0 = arith.constant 0 : index
    %c0_0 = arith.constant 0 : index
    %1 = vector.load %arg6[%c0, %c0_0] : memref<16x342xbf16, #tpu.memory_space<vmem>>, vector<16x19xbf16>
    tpu.vector_store %arg6[%c0, %c0_0], %0 {strides = array<i32>} : memref<16x342xbf16, #tpu.memory_space<vmem>>, vector<16x19xbf16>,
    %cst_1 = arith.constant 0.000000e+00 : bf16
    %2 = vector.broadcast %cst_1 : bf16 to vector<16x35xbf16>
    %c0_2 = arith.constant 0 : index
    %c307 = arith.constant 307 : index
    %3 = vector.load %arg6[%c0_2, %c307] : memref<16x342xbf16, #tpu.memory_space<vmem>>, vector<16x35xbf16>
    tpu.vector_store %arg6[%c0_2, %c307], %2 {strides = array<i32>} : memref<16x342xbf16, #tpu.memory_space<vmem>>, vector<16x35xbf16>,
    %c0_3 = arith.constant 0 : index
    %c0_4 = arith.constant 0 : index
    %c0_5 = arith.constant 0 : index
    %c0_6 = arith.constant 0 : index
    %4 = vector.load %arg1[%c0_3, %c0_4, %c0_5, %c0_6] : memref<1x16x16x16xf32, #tpu.memory_space<vmem>>, vector<1x16x16x16xf32>
    %5 = vector.shape_cast %4 : vector<1x16x16x16xf32> to vector<16x16x16xf32>
    %6 = arith.truncf %5 : vector<16x16x16xf32> to vector<16x16x16xbf16>
    %cst_7 = arith.constant 0.000000e+00 : bf16
    %7 = vector.broadcast %cst_7 : bf16 to vector<16x16x2xbf16>
    %8 = tpu.concatenate %6, %7 in 2 : vector<16x16x16xbf16>, vector<16x16x2xbf16> -> vector<16x16x18xbf16>
    %9 = vector.extract_strided_slice %8 {offsets = [0, 0, 0], sizes = [16, 1, 18], strides = [1, 1, 1]} : vector<16x16x18xbf16> to vector<16x1x18xbf16>
    %10 = vector.shape_cast %9 : vector<16x1x18xbf16> to vector<16x18xbf16>
    %c0_8 = arith.constant 0 : index
    %c19 = arith.constant 19 : index
    %11 = vector.load %arg6[%c0_8, %c19] : memref<16x342xbf16, #tpu.memory_space<vmem>>, vector<16x18xbf16>
    tpu.vector_store %arg6[%c0_8, %c19], %10 {strides = array<i32>} : memref<16x342xbf16, #tpu.memory_space<vmem>>, vector<16x18xbf16>,
    %12 = vector.extract_strided_slice %8 {offsets = [0, 1, 0], sizes = [16, 1, 18], strides = [1, 1, 1]} : vector<16x16x18xbf16> to vector<16x1x18xbf16>
    %13 = vector.shape_cast %12 : vector<16x1x18xbf16> to vector<16x18xbf16>
    %c0_9 = arith.constant 0 : index
    %c37 = arith.constant 37 : index
    %14 = vector.load %arg6[%c0_9, %c37] : memref<16x342xbf16, #tpu.memory_space<vmem>>, vector<16x18xbf16>
    tpu.vector_store %arg6[%c0_9, %c37], %13 {strides = array<i32>} : memref<16x342xbf16, #tpu.memory_space<vmem>>, vector<16x18xbf16>,
    %15 = vector.extract_strided_slice %8 {offsets = [0, 2, 0], sizes = [16, 1, 18], strides = [1, 1, 1]} : vector<16x16x18xbf16> to vector<16x1x18xbf16>
    %16 = vector.shape_cast %15 : vector<16x1x18xbf16> to vector<16x18xbf16>
    %c0_10 = arith.constant 0 : index
    %c55 = arith.constant 55 : index
    %17 = vector.load %arg6[%c0_10, %c55] : memref<16x342xbf16, #tpu.memory_space<vmem>>, vector<16x18xbf16>
    tpu.vector_store %arg6[%c0_10, %c55], %16 {strides = array<i32>} : memref<16x342xbf16, #tpu.memory_space<vmem>>, vector<16x18xbf16>,
    %18 = vector.extract_strided_slice %8 {offsets = [0, 3, 0], sizes = [16, 1, 18], strides = [1, 1, 1]} : vector<16x16x18xbf16> to vector<16x1x18xbf16>
    %19 = vector.shape_cast %18 : vector<16x1x18xbf16> to vector<16x18xbf16>
    %c0_11 = arith.constant 0 : index
    %c73 = arith.constant 73 : index
    %20 = vector.load %arg6[%c0_11, %c73] : memref<16x342xbf16, #tpu.memory_space<vmem>>, vector<16x18xbf16>
    tpu.vector_store %arg6[%c0_11, %c73], %19 {strides = array<i32>} : memref<16x342xbf16, #tpu.memory_space<vmem>>, vector<16x18xbf16>,
    %21 = vector.extract_strided_slice %8 {offsets = [0, 4, 0], sizes = [16, 1, 18], strides = [1, 1, 1]} : vector<16x16x18xbf16> to vector<16x1x18xbf16>
    %22 = vector.shape_cast %21 : vector<16x1x18xbf16> to vector<16x18xbf16>
    %c0_12 = arith.constant 0 : index
    %c91 = arith.constant 91 : index
    %23 = vector.load %arg6[%c0_12, %c91] : memref<16x342xbf16, #tpu.memory_space<vmem>>, vector<16x18xbf16>
    tpu.vector_store %arg6[%c0_12, %c91], %22 {strides = array<i32>} : memref<16x342xbf16, #tpu.memory_space<vmem>>, vector<16x18xbf16>,
    %24 = vector.extract_strided_slice %8 {offsets = [0, 5, 0], sizes = [16, 1, 18], strides = [1, 1, 1]} : vector<16x16x18xbf16> to vector<16x1x18xbf16>
    %25 = vector.shape_cast %24 : vector<16x1x18xbf16> to vector<16x18xbf16>
    %c0_13 = arith.constant 0 : index
    %c109 = arith.constant 109 : index
    %26 = vector.load %arg6[%c0_13, %c109] : memref<16x342xbf16, #tpu.memory_space<vmem>>, vector<16x18xbf16>
    tpu.vector_store %arg6[%c0_13, %c109], %25 {strides = array<i32>} : memref<16x342xbf16, #tpu.memory_space<vmem>>, vector<16x18xbf16>,
    %27 = vector.extract_strided_slice %8 {offsets = [0, 6, 0], sizes = [16, 1, 18], strides = [1, 1, 1]} : vector<16x16x18xbf16> to vector<16x1x18xbf16>
    %28 = vector.shape_cast %27 : vector<16x1x18xbf16> to vector<16x18xbf16>
    %c0_14 = arith.constant 0 : index
    %c127 = arith.constant 127 : index
    %29 = vector.load %arg6[%c0_14, %c127] : memref<16x342xbf16, #tpu.memory_space<vmem>>, vector<16x18xbf16>
    tpu.vector_store %arg6[%c0_14, %c127], %28 {strides = array<i32>} : memref<16x342xbf16, #tpu.memory_space<vmem>>, vector<16x18xbf16>,
    %30 = vector.extract_strided_slice %8 {offsets = [0, 7, 0], sizes = [16, 1, 18], strides = [1, 1, 1]} : vector<16x16x18xbf16> to vector<16x1x18xbf16>
    %31 = vector.shape_cast %30 : vector<16x1x18xbf16> to vector<16x18xbf16>
    %c0_15 = arith.constant 0 : index
    %c145 = arith.constant 145 : index
    %32 = vector.load %arg6[%c0_15, %c145] : memref<16x342xbf16, #tpu.memory_space<vmem>>, vector<16x18xbf16>
    tpu.vector_store %arg6[%c0_15, %c145], %31 {strides = array<i32>} : memref<16x342xbf16, #tpu.memory_space<vmem>>, vector<16x18xbf16>,
    %33 = vector.extract_strided_slice %8 {offsets = [0, 8, 0], sizes = [16, 1, 18], strides = [1, 1, 1]} : vector<16x16x18xbf16> to vector<16x1x18xbf16>
    %34 = vector.shape_cast %33 : vector<16x1x18xbf16> to vector<16x18xbf16>
    %c0_16 = arith.constant 0 : index
    %c163 = arith.constant 163 : index
    %35 = vector.load %arg6[%c0_16, %c163] : memref<16x342xbf16, #tpu.memory_space<vmem>>, vector<16x18xbf16>
    tpu.vector_store %arg6[%c0_16, %c163], %34 {strides = array<i32>} : memref<16x342xbf16, #tpu.memory_space<vmem>>, vector<16x18xbf16>,
    %36 = vector.extract_strided_slice %8 {offsets = [0, 9, 0], sizes = [16, 1, 18], strides = [1, 1, 1]} : vector<16x16x18xbf16> to vector<16x1x18xbf16>
    %37 = vector.shape_cast %36 : vector<16x1x18xbf16> to vector<16x18xbf16>
    %c0_17 = arith.constant 0 : index
    %c181 = arith.constant 181 : index
    %38 = vector.load %arg6[%c0_17, %c181] : memref<16x342xbf16, #tpu.memory_space<vmem>>, vector<16x18xbf16>
    tpu.vector_store %arg6[%c0_17, %c181], %37 {strides = array<i32>} : memref<16x342xbf16, #tpu.memory_space<vmem>>, vector<16x18xbf16>,
    %39 = vector.extract_strided_slice %8 {offsets = [0, 10, 0], sizes = [16, 1, 18], strides = [1, 1, 1]} : vector<16x16x18xbf16> to vector<16x1x18xbf16>
    %40 = vector.shape_cast %39 : vector<16x1x18xbf16> to vector<16x18xbf16>
    %c0_18 = arith.constant 0 : index
    %c199 = arith.constant 199 : index
    %41 = vector.load %arg6[%c0_18, %c199] : memref<16x342xbf16, #tpu.memory_space<vmem>>, vector<16x18xbf16>
    tpu.vector_store %arg6[%c0_18, %c199], %40 {strides = array<i32>} : memref<16x342xbf16, #tpu.memory_space<vmem>>, vector<16x18xbf16>,
    %42 = vector.extract_strided_slice %8 {offsets = [0, 11, 0], sizes = [16, 1, 18], strides = [1, 1, 1]} : vector<16x16x18xbf16> to vector<16x1x18xbf16>
    %43 = vector.shape_cast %42 : vector<16x1x18xbf16> to vector<16x18xbf16>
    %c0_19 = arith.constant 0 : index
    %c217 = arith.constant 217 : index
    %44 = vector.load %arg6[%c0_19, %c217] : memref<16x342xbf16, #tpu.memory_space<vmem>>, vector<16x18xbf16>
    tpu.vector_store %arg6[%c0_19, %c217], %43 {strides = array<i32>} : memref<16x342xbf16, #tpu.memory_space<vmem>>, vector<16x18xbf16>,
    %45 = vector.extract_strided_slice %8 {offsets = [0, 12, 0], sizes = [16, 1, 18], strides = [1, 1, 1]} : vector<16x16x18xbf16> to vector<16x1x18xbf16>
    %46 = vector.shape_cast %45 : vector<16x1x18xbf16> to vector<16x18xbf16>
    %c0_20 = arith.constant 0 : index
    %c235 = arith.constant 235 : index
    %47 = vector.load %arg6[%c0_20, %c235] : memref<16x342xbf16, #tpu.memory_space<vmem>>, vector<16x18xbf16>
    tpu.vector_store %arg6[%c0_20, %c235], %46 {strides = array<i32>} : memref<16x342xbf16, #tpu.memory_space<vmem>>, vector<16x18xbf16>,
    %48 = vector.extract_strided_slice %8 {offsets = [0, 13, 0], sizes = [16, 1, 18], strides = [1, 1, 1]} : vector<16x16x18xbf16> to vector<16x1x18xbf16>
    %49 = vector.shape_cast %48 : vector<16x1x18xbf16> to vector<16x18xbf16>
    %c0_21 = arith.constant 0 : index
    %c253 = arith.constant 253 : index
    %50 = vector.load %arg6[%c0_21, %c253] : memref<16x342xbf16, #tpu.memory_space<vmem>>, vector<16x18xbf16>
    tpu.vector_store %arg6[%c0_21, %c253], %49 {strides = array<i32>} : memref<16x342xbf16, #tpu.memory_space<vmem>>, vector<16x18xbf16>,
    %51 = vector.extract_strided_slice %8 {offsets = [0, 14, 0], sizes = [16, 1, 18], strides = [1, 1, 1]} : vector<16x16x18xbf16> to vector<16x1x18xbf16>
    %52 = vector.shape_cast %51 : vector<16x1x18xbf16> to vector<16x18xbf16>
    %c0_22 = arith.constant 0 : index
    %c271 = arith.constant 271 : index
    %53 = vector.load %arg6[%c0_22, %c271] : memref<16x342xbf16, #tpu.memory_space<vmem>>, vector<16x18xbf16>
    tpu.vector_store %arg6[%c0_22, %c271], %52 {strides = array<i32>} : memref<16x342xbf16, #tpu.memory_space<vmem>>, vector<16x18xbf16>,
    %54 = vector.extract_strided_slice %8 {offsets = [0, 15, 0], sizes = [16, 1, 18], strides = [1, 1, 1]} : vector<16x16x18xbf16> to vector<16x1x18xbf16>
    %55 = vector.shape_cast %54 : vector<16x1x18xbf16> to vector<16x18xbf16>
    %c0_23 = arith.constant 0 : index
    %c289 = arith.constant 289 : index
    %56 = vector.load %arg6[%c0_23, %c289] : memref<16x342xbf16, #tpu.memory_space<vmem>>, vector<16x18xbf16>
    tpu.vector_store %arg6[%c0_23, %c289], %55 {strides = array<i32>} : memref<16x342xbf16, #tpu.memory_space<vmem>>, vector<16x18xbf16>,
    %c0_24 = arith.constant 0 : index
    %c0_25 = arith.constant 0 : index
    %c0_26 = arith.constant 0 : index
    %57 = vector.load %arg2[%c0_24, %c0_25, %c0_26] : memref<9x16x16xbf16, #tpu.memory_space<vmem>>, vector<1x16x16xbf16>
    %58 = vector.shape_cast %57 : vector<1x16x16xbf16> to vector<16x16xbf16>
    %c0_27 = arith.constant 0 : index
    %c0_28 = arith.constant 0 : index
    %59 = vector.load %arg6[%c0_27, %c0_28] : memref<16x342xbf16, #tpu.memory_space<vmem>>, vector<16x288xbf16>
    %cst_29 = arith.constant dense<0.000000e+00> : vector<16x288xf32>
    %60 = tpu.matmul %58, %59, %cst_29 {dimension_numbers = #tpu.dot_dimension_numbers<[1], [0], [0], [1], [0, 0, 1, 1], [], []>} : vector<16x16xbf16>, vector<16x288xbf16>, vector<16x288xf32> -> vector<16x288xf32>
    %c1 = arith.constant 1 : index
    %c0_30 = arith.constant 0 : index
    %c0_31 = arith.constant 0 : index
    %61 = vector.load %arg2[%c1, %c0_30, %c0_31] : memref<9x16x16xbf16, #tpu.memory_space<vmem>>, vector<1x16x16xbf16>
    %62 = vector.shape_cast %61 : vector<1x16x16xbf16> to vector<16x16xbf16>
    %c0_32 = arith.constant 0 : index
    %c1_33 = arith.constant 1 : index
    %63 = vector.load %arg6[%c0_32, %c1_33] : memref<16x342xbf16, #tpu.memory_space<vmem>>, vector<16x288xbf16>
    %cst_34 = arith.constant dense<0.000000e+00> : vector<16x288xf32>
    %64 = tpu.matmul %62, %63, %cst_34 {dimension_numbers = #tpu.dot_dimension_numbers<[1], [0], [0], [1], [0, 0, 1, 1], [], []>} : vector<16x16xbf16>, vector<16x288xbf16>, vector<16x288xf32> -> vector<16x288xf32>
    %65 = arith.addf %60, %64 : vector<16x288xf32>
    %c2 = arith.constant 2 : index
    %c0_35 = arith.constant 0 : index
    %c0_36 = arith.constant 0 : index
    %66 = vector.load %arg2[%c2, %c0_35, %c0_36] : memref<9x16x16xbf16, #tpu.memory_space<vmem>>, vector<1x16x16xbf16>
    %67 = vector.shape_cast %66 : vector<1x16x16xbf16> to vector<16x16xbf16>
    %c0_37 = arith.constant 0 : index
    %c2_38 = arith.constant 2 : index
    %68 = vector.load %arg6[%c0_37, %c2_38] : memref<16x342xbf16, #tpu.memory_space<vmem>>, vector<16x288xbf16>
    %cst_39 = arith.constant dense<0.000000e+00> : vector<16x288xf32>
    %69 = tpu.matmul %67, %68, %cst_39 {dimension_numbers = #tpu.dot_dimension_numbers<[1], [0], [0], [1], [0, 0, 1, 1], [], []>} : vector<16x16xbf16>, vector<16x288xbf16>, vector<16x288xf32> -> vector<16x288xf32>
    %70 = arith.addf %65, %69 : vector<16x288xf32>
    %c3 = arith.constant 3 : index
    %c0_40 = arith.constant 0 : index
    %c0_41 = arith.constant 0 : index
    %71 = vector.load %arg2[%c3, %c0_40, %c0_41] : memref<9x16x16xbf16, #tpu.memory_space<vmem>>, vector<1x16x16xbf16>
    %72 = vector.shape_cast %71 : vector<1x16x16xbf16> to vector<16x16xbf16>
    %c0_42 = arith.constant 0 : index
    %c18 = arith.constant 18 : index
    %73 = vector.load %arg6[%c0_42, %c18] : memref<16x342xbf16, #tpu.memory_space<vmem>>, vector<16x288xbf16>
    %cst_43 = arith.constant dense<0.000000e+00> : vector<16x288xf32>
    %74 = tpu.matmul %72, %73, %cst_43 {dimension_numbers = #tpu.dot_dimension_numbers<[1], [0], [0], [1], [0, 0, 1, 1], [], []>} : vector<16x16xbf16>, vector<16x288xbf16>, vector<16x288xf32> -> vector<16x288xf32>
    %75 = arith.addf %70, %74 : vector<16x288xf32>
    %c4 = arith.constant 4 : index
    %c0_44 = arith.constant 0 : index
    %c0_45 = arith.constant 0 : index
    %76 = vector.load %arg2[%c4, %c0_44, %c0_45] : memref<9x16x16xbf16, #tpu.memory_space<vmem>>, vector<1x16x16xbf16>
    %77 = vector.shape_cast %76 : vector<1x16x16xbf16> to vector<16x16xbf16>
    %c0_46 = arith.constant 0 : index
    %c19_47 = arith.constant 19 : index
    %78 = vector.load %arg6[%c0_46, %c19_47] : memref<16x342xbf16, #tpu.memory_space<vmem>>, vector<16x288xbf16>
    %cst_48 = arith.constant dense<0.000000e+00> : vector<16x288xf32>
    %79 = tpu.matmul %77, %78, %cst_48 {dimension_numbers = #tpu.dot_dimension_numbers<[1], [0], [0], [1], [0, 0, 1, 1], [], []>} : vector<16x16xbf16>, vector<16x288xbf16>, vector<16x288xf32> -> vector<16x288xf32>
    %80 = arith.addf %75, %79 : vector<16x288xf32>
    %c5 = arith.constant 5 : index
    %c0_49 = arith.constant 0 : index
    %c0_50 = arith.constant 0 : index
    %81 = vector.load %arg2[%c5, %c0_49, %c0_50] : memref<9x16x16xbf16, #tpu.memory_space<vmem>>, vector<1x16x16xbf16>
    %82 = vector.shape_cast %81 : vector<1x16x16xbf16> to vector<16x16xbf16>
    %c0_51 = arith.constant 0 : index
    %c20 = arith.constant 20 : index
    %83 = vector.load %arg6[%c0_51, %c20] : memref<16x342xbf16, #tpu.memory_space<vmem>>, vector<16x288xbf16>
    %cst_52 = arith.constant dense<0.000000e+00> : vector<16x288xf32>
    %84 = tpu.matmul %82, %83, %cst_52 {dimension_numbers = #tpu.dot_dimension_numbers<[1], [0], [0], [1], [0, 0, 1, 1], [], []>} : vector<16x16xbf16>, vector<16x288xbf16>, vector<16x288xf32> -> vector<16x288xf32>
    %85 = arith.addf %80, %84 : vector<16x288xf32>
    %c6 = arith.constant 6 : index
    %c0_53 = arith.constant 0 : index
    %c0_54 = arith.constant 0 : index
    %86 = vector.load %arg2[%c6, %c0_53, %c0_54] : memref<9x16x16xbf16, #tpu.memory_space<vmem>>, vector<1x16x16xbf16>
    %87 = vector.shape_cast %86 : vector<1x16x16xbf16> to vector<16x16xbf16>
    %c0_55 = arith.constant 0 : index
    %c36 = arith.constant 36 : index
    %88 = vector.load %arg6[%c0_55, %c36] : memref<16x342xbf16, #tpu.memory_space<vmem>>, vector<16x288xbf16>
    %cst_56 = arith.constant dense<0.000000e+00> : vector<16x288xf32>
    %89 = tpu.matmul %87, %88, %cst_56 {dimension_numbers = #tpu.dot_dimension_numbers<[1], [0], [0], [1], [0, 0, 1, 1], [], []>} : vector<16x16xbf16>, vector<16x288xbf16>, vector<16x288xf32> -> vector<16x288xf32>
    %90 = arith.addf %85, %89 : vector<16x288xf32>
    %c7 = arith.constant 7 : index
    %c0_57 = arith.constant 0 : index
    %c0_58 = arith.constant 0 : index
    %91 = vector.load %arg2[%c7, %c0_57, %c0_58] : memref<9x16x16xbf16, #tpu.memory_space<vmem>>, vector<1x16x16xbf16>
    %92 = vector.shape_cast %91 : vector<1x16x16xbf16> to vector<16x16xbf16>
    %c0_59 = arith.constant 0 : index
    %c37_60 = arith.constant 37 : index
    %93 = vector.load %arg6[%c0_59, %c37_60] : memref<16x342xbf16, #tpu.memory_space<vmem>>, vector<16x288xbf16>
    %cst_61 = arith.constant dense<0.000000e+00> : vector<16x288xf32>
    %94 = tpu.matmul %92, %93, %cst_61 {dimension_numbers = #tpu.dot_dimension_numbers<[1], [0], [0], [1], [0, 0, 1, 1], [], []>} : vector<16x16xbf16>, vector<16x288xbf16>, vector<16x288xf32> -> vector<16x288xf32>
    %95 = arith.addf %90, %94 : vector<16x288xf32>
    %c8 = arith.constant 8 : index
    %c0_62 = arith.constant 0 : index
    %c0_63 = arith.constant 0 : index
    %96 = vector.load %arg2[%c8, %c0_62, %c0_63] : memref<9x16x16xbf16, #tpu.memory_space<vmem>>, vector<1x16x16xbf16>
    %97 = vector.shape_cast %96 : vector<1x16x16xbf16> to vector<16x16xbf16>
    %c0_64 = arith.constant 0 : index
    %c38 = arith.constant 38 : index
    %98 = vector.load %arg6[%c0_64, %c38] : memref<16x342xbf16, #tpu.memory_space<vmem>>, vector<16x288xbf16>
    %cst_65 = arith.constant dense<0.000000e+00> : vector<16x288xf32>
    %99 = tpu.matmul %97, %98, %cst_65 {dimension_numbers = #tpu.dot_dimension_numbers<[1], [0], [0], [1], [0, 0, 1, 1], [], []>} : vector<16x16xbf16>, vector<16x288xbf16>, vector<16x288xf32> -> vector<16x288xf32>
    %100 = arith.addf %95, %99 : vector<16x288xf32>
    %c0_66 = arith.constant 0 : index
    %c0_67 = arith.constant 0 : index
    %101 = vector.load %arg4[%c0_66, %c0_67] : memref<1x288xf32, #tpu.memory_space<vmem>>, vector<1x288xf32>
    %102 = vector.broadcast %101 : vector<1x288xf32> to vector<16x288xf32>
    %103 = arith.mulf %100, %102 : vector<16x288xf32>
    %cst_68 = arith.constant dense<0.000000e+00> : vector<16xf32>
    %104 = vector.multi_reduction <add>, %103, %cst_68 [1] : vector<16x288xf32> to vector<16xf32>
    %105 = vector.shape_cast %104 : vector<16xf32> to vector<16x1xf32>
    %cst_69 = arith.constant 3.906250e-03 : f32
    %106 = vector.broadcast %cst_69 : f32 to vector<16x1xf32>
    %107 = arith.mulf %105, %106 : vector<16x1xf32>
    %108 = arith.mulf %103, %100 : vector<16x288xf32>
    %cst_70 = arith.constant dense<0.000000e+00> : vector<16xf32>
    %109 = vector.multi_reduction <add>, %108, %cst_70 [1] : vector<16x288xf32> to vector<16xf32>
    %110 = vector.shape_cast %109 : vector<16xf32> to vector<16x1xf32>
    %cst_71 = arith.constant 3.906250e-03 : f32
    %111 = vector.broadcast %cst_71 : f32 to vector<16x1xf32>
    %112 = arith.mulf %110, %111 : vector<16x1xf32>
    %113 = arith.mulf %107, %107 : vector<16x1xf32>
    %114 = arith.subf %112, %113 : vector<16x1xf32>
    %cst_72 = arith.constant 0.000000e+00 : f32
    %115 = vector.broadcast %cst_72 : f32 to vector<16x1xf32>
    %116 = arith.maximumf %114, %115 : vector<16x1xf32>
    %117 = vector.broadcast %107 : vector<16x1xf32> to vector<16x288xf32>
    %118 = arith.subf %100, %117 : vector<16x288xf32>
    %cst_73 = arith.constant 9.99999974E-6 : f32
    %119 = vector.broadcast %cst_73 : f32 to vector<16x1xf32>
    %120 = arith.addf %116, %119 : vector<16x1xf32>
    %121 = math.rsqrt %120 : vector<16x1xf32>
    %122 = vector.broadcast %121 : vector<16x1xf32> to vector<16x288xf32>
    %123 = arith.mulf %118, %122 : vector<16x288xf32>
    %c0_74 = arith.constant 0 : index
    %c0_75 = arith.constant 0 : index
    %c0_76 = arith.constant 0 : index
    %124 = vector.load %arg3[%c0_74, %c0_75, %c0_76] : memref<1x16x1xf32, #tpu.memory_space<vmem>>, vector<1x16x1xf32>
    %125 = vector.shape_cast %124 : vector<1x16x1xf32> to vector<16x1xf32>
    %126 = vector.broadcast %125 : vector<16x1xf32> to vector<16x288xf32>
    %127 = arith.addf %123, %126 : vector<16x288xf32>
    %cst_77 = arith.constant 0.000000e+00 : f32
    %128 = vector.broadcast %cst_77 : f32 to vector<16x288xf32>
    %129 = arith.cmpf ogt, %127, %128 : vector<16x288xf32>
    %cst_78 = arith.constant 0.00999999977 : f32
    %130 = vector.broadcast %cst_78 : f32 to vector<16x288xf32>
    %131 = arith.mulf %130, %127 : vector<16x288xf32>
    %132 = arith.select %129, %127, %131 : vector<16x288xi1>, vector<16x288xf32>
    %133 = vector.broadcast %101 : vector<1x288xf32> to vector<16x288xf32>
    %134 = arith.mulf %132, %133 : vector<16x288xf32>
    %135 = arith.truncf %134 : vector<16x288xf32> to vector<16x288xbf16>
    %c0_79 = arith.constant 0 : index
    %c0_80 = arith.constant 0 : index
    %c0_81 = arith.constant 0 : index
    %136 = vector.load %arg5[%c0_79, %c0_80, %c0_81] : memref<1x16x288xbf16, #tpu.memory_space<vmem>>, vector<1x16x288xbf16>
    %137 = vector.shape_cast %136 : vector<1x16x288xbf16> to vector<16x288xbf16>
    %138 = vector.shape_cast %135 : vector<16x288xbf16> to vector<1x16x288xbf16>
    tpu.vector_store %arg5[%c0_79, %c0_80, %c0_81], %138 {strides = array<i32>} : memref<1x16x288xbf16, #tpu.memory_space<vmem>>, vector<1x16x288xbf16>,
    return
  }
  func.func @transform_0(%arg0: i32) -> (i32, i32, i32, i32) {
    %c0_i32 = arith.constant 0 : i32
    %c0_i32_0 = arith.constant 0 : i32
    %c0_i32_1 = arith.constant 0 : i32
    %c0_i32_2 = arith.constant 0 : i32
    return %arg0, %c0_i32, %c0_i32_0, %c0_i32_1 : i32, i32, i32, i32
  }
  func.func @transform_1(%arg0: i32) -> (i32, i32, i32) {
    %c0_i32 = arith.constant 0 : i32
    %c0_i32_0 = arith.constant 0 : i32
    %c0_i32_1 = arith.constant 0 : i32
    %c0_i32_2 = arith.constant 0 : i32
    return %c0_i32, %c0_i32_0, %c0_i32_1 : i32, i32, i32
  }
  func.func @transform_2(%arg0: i32) -> (i32, i32, i32) {
    %c0_i32 = arith.constant 0 : i32
    %c0_i32_0 = arith.constant 0 : i32
    %c0_i32_1 = arith.constant 0 : i32
    return %arg0, %c0_i32, %c0_i32_0 : i32, i32, i32
  }
  func.func @transform_3(%arg0: i32) -> (i32, i32) {
    %c0_i32 = arith.constant 0 : i32
    %c0_i32_0 = arith.constant 0 : i32
    %c0_i32_1 = arith.constant 0 : i32
    return %c0_i32, %c0_i32_0 : i32, i32
  }
  func.func @transform_4(%arg0: i32) -> (i32, i32, i32) {
    %c0_i32 = arith.constant 0 : i32
    %c0_i32_0 = arith.constant 0 : i32
    %c0_i32_1 = arith.constant 0 : i32
    return %arg0, %c0_i32, %c0_i32_0 : i32, i32, i32
  }
}

</mosaic_0001>

<bundles_post_ra>
// kernel: tpu_custom_call.1
= control target key start
LH: loop header
LB: loop body
LE: loop exit
PB: predicated region body
PF: predicated region fallthrough
CT: control target
= control target key end

     0   :  { %9 = vsyncpa [#allocation4], 0  ;;  %s3649_s0 = inlined_call_operand.hbm [shape: f32[2,16,16,16], index: 0, kind: input, shape index: {}]   ;;  %s3650_s1 = inlined_call_operand.hbm [shape: bf16[9,16,16], index: 1, kind: input, shape index: {}]   ;;  %s3651_s2 = inlined_call_operand.vmem [shape: f32[2,16,1], index: 2, kind: input, shape index: {}]   ;;  %s3652_s3 = inlined_call_operand.vmem [shape: f32[1,288], index: 3, kind: input, shape index: {}]   ;;  %s3653_s4 = inlined_call_operand.hbm [shape: bf16[2,16,288], index: 4, kind: output, shape index: {}]  }
   0x1   :  { %11 = vsyncpa [#allocation4 + $0x1], 0 }
   0x2   :  { %12 = vsyncpa [#allocation7], 0 }
   0x3   :  { %13 = vsyncpa [#allocation5], 0 }
   0x4   :  { %15 = vsyncpa [#allocation5 + $0x1], 0  ;;  %s2671_s15 = smov 0   ;;  %s2673_s16 = smov 0  }
   0x5   :  { %s2675_s17 = smov 0   ;;  %s2677_s18 = smov 0  }
   0x6 LB: > { %s2692_s19 = sadd.s32 4294967295, %s2611_s18   ;;  %s2191_s20 = sadd.s32 4294967294, %s2611_s18   ;;  %s2611_s18 = sphi %s2677_s18, %s3673_s18   ;;  %s2607_s17 = sphi %s2675_s17, %s3672_s17   ;;  %s2603_s16 = sphi %s2673_s16, %s3671_s16   ;;  %s2599_s15 = sphi %s2671_s15, %s3670_s15  }
   0x7   : > { %p41_p0 = scmp.ne.s32.totalorder %s2603_s16, %s2599_s15  ;;  %p3654_p1 = scmp.eq.s32.totalorder %s2692_s19, 0 }
   0x8   : > { %p139_p3 = scmp.eq.s32.totalorder %s2191_s20, 1  ;;  %p2192_p5 = scmp.ge.s32.totalorder %s2611_s18, 1 }
   0x9   : > { %p2701_p4 = por %p3654_p1, %p41_p0  ;;  %p146_p7 = scmp.lt.s32.totalorder %s2611_s18, 3 }
   0xa   : > { %p2706_p6 = por %p139_p3, %p41_p0  ;;  %s2613_s24 = smov [#allocation6]  }
   0xb   : > { %s3657_s21 = scalar_select %p2701_p4, 1, 0 }
   0xc   : > { %s3658_s22 = scalar_select %p2706_p6, 1, 0 }
   0xd   : > { %p2711_p8 = pnand %p2192_p5, %p146_p7  ;;  %s158_s25 = sshll.u32 %s2613_s24, 4  ;;  %s2715_s25 = int_to_ptr.vmem [resolvable:$true] %s158_s25 }
   0xe   : > { %s2727_s27 = sadd.s32 1, %s2611_s18   ;;  %s28_s28 = sadd.s32 1, %s2607_s17 }
   0xf   : > { %s3659_s23 = scalar_select %p2711_p8, 1, 0 }
  0x10   : > { %p2389_p9 = pneg %p2711_p8  ;;  %s25_s29 = ssub.s32 %s2611_s18, %s2727_s27 }
  0x11   : > { %s2483_s6 = scalar_lea.hbm %s3650_s1, 1152 }
  0x12   : > { %p2722_p11 = pnand %p2389_p9, %p3654_p1  ;;  %p2484_p12 = scmp.ne.s32.totalorder %s3650_s1, %s2483_s6 }
  0x13   : > { %p2490_p5 = scmp.lt.u32.totalorder %s2483_s6, %s3650_s1 }
  0x14   : > { %p2485_p13 = pneg %p2722_p11 }
  0x16   : > { %p2486_p0 = pnand %p2485_p13, %p2484_p12 }
  0x18   : > { %p2487_p3 = pneg %p2486_p0 }
  0x1a   : > { %p2492_p7 = pnand %p2490_p5, %p2487_p3 }
  0x1c   : > { %2495 = shalt.err (!%p2492_p7)
}
  0x1d   : > { %s2496_s11 = scalar_lea.vmem %s2715_s25, 1152  ;;  %p2504_p2 = scmp.lt.s32.totalorder %s2715_s25, %s2715_s25 }
  0x1e   : > { %p2497_p9 = scmp.ne.s32.totalorder %s2715_s25, %s2496_s11  ;;  %p2505_p6 = scmp.lt.s32.totalorder %s2496_s11, %s2496_s11 }
  0x20   : > { %p2499_p10 = pnand %p2497_p9, %p2485_p13  ;;  %p2506_p4 = por %p2505_p6, %p2504_p2 }
  0x22   : > { %p2500_p1 = pneg %p2499_p10 }
  0x24   : > { %p2507_p8 = pnand %p2506_p4, %p2500_p1 }
  0x26   : > { %2510 = shalt.err (!%p2507_p8)
}
  0x27   : > { %s2614_s12 = smov 64   ;;  %s2615_s13 = smov 4  }
  0x28   : > { %2392 = dma.hbm_to_vmem [thread:$0]  (!%p2722_p11), %s3650_s1, 1152, %s2715_s25, [#allocation7], %s2614_s12, %s2614_s12, %s2615_s13  }
  0x29   : > { %p26_p2 = scmp.eq.s32.totalorder %s25_s29, 0  ;;  %p35_p1 = scmp.ne.s32.totalorder %s2607_s17, %s2603_s16 }
  0x2a   : > { %p36_p4 = scmp.eq.s32.totalorder %s2611_s18, 0  ;;  %p2402_p6 = scmp.lt.s32.totalorder %s2611_s18, 2 }
  0x2b   : > { %s2758_s24 = scalar_select %p26_p2, %s2607_s17, %s28_s28  }
  0x2c   : > { %p37_p8 = por %p36_p4, %p35_p1  ;;  %p3661_p10 = scmp.eq.s32.totalorder %s2692_s19, 1 }
  0x2d   : > { %s175_s5 = sand.u32 1, %s2607_s17   ;;  %s2237_s6 = sshll.u32 %s2611_s18, 12 }
  0x2e   : > { %p2762_p12 = por %p3661_p10, %p35_p1  ;;  %s2195_s7 = sshll.u32 %s175_s5, 8 }
  0x2f   : > { %s2771_s9 = scalar_lea.hbm %s3649_s0, %s2237_s6  ;;  %s179_s25 = scalar_lea.vmem [#allocation3], %s2195_s7 }
  0x30   : > { %s186_s28 = sshll.u32 %s179_s25, 4  ;;  %p2773_p11 = pnand %p2402_p6, %p37_p8  ;;  %s2777_s28 = int_to_ptr.vmem [resolvable:$true] %s186_s28 }
  0x31   : > { %s2779_s10 = scalar_lea.sflag [#allocation4], %s175_s5  ;;  %s2511_s11 = scalar_lea.hbm %s2771_s9, 4096 }
  0x32   : > { %p2512_p13 = scmp.ne.s32.totalorder %s2771_s9, %s2511_s11  ;;  %p2513_p0 = pneg %p2773_p11 }
  0x33   : > { %s2516_s14 = scalar_lea.hbm %s3649_s0, 8192  ;;  %p2517_p7 = scmp.lt.u32.totalorder %s2771_s9, %s3649_s0 }
  0x34   : > { %p2514_p3 = pnand %p2513_p0, %p2512_p13  ;;  %p2518_p9 = scmp.lt.u32.totalorder %s2516_s14, %s2511_s11 }
  0x35   : > { %p2520_p1 = scmp.lt.u32.totalorder %s2511_s11, %s2771_s9 }
  0x36   : > { %p2515_p5 = pneg %p2514_p3  ;;  %p2519_p2 = por %p2518_p9, %p2517_p7 }
  0x38   : > { %p2521_p4 = por %p2520_p1, %p2519_p2 }
  0x3a   : > { %p2522_p6 = pnand %p2521_p4, %p2515_p5 }
  0x3c   : > { %2525 = shalt.err (!%p2522_p6)
}
  0x3d   : > { %s2526_s5 = scalar_lea.vmem %s2777_s28, 4096  ;;  %s2616_s7 = smov [#allocation3]  }
  0x3e   : > { %p2527_p8 = scmp.ne.s32.totalorder %s2777_s28, %s2526_s5  ;;  %s2531_s26 = sshll.u32 %s2616_s7, 4  ;;  %s2532_s26 = int_to_ptr.vmem [resolvable:$false] %s2531_s26 }
  0x3f   : > { %s2533_s8 = scalar_lea.vmem %s2532_s26, 8192  ;;  %p2534_p3 = scmp.lt.s32.totalorder %s2777_s28, %s2532_s26 }
  0x40   : > { %p2529_p10 = pnand %p2527_p8, %p2513_p0  ;;  %p2535_p7 = scmp.lt.s32.totalorder %s2533_s8, %s2526_s5 }
  0x42   : > { %p2530_p13 = pneg %p2529_p10  ;;  %p2536_p9 = por %p2535_p7, %p2534_p3 }
  0x44   : > { %p2537_p2 = pnand %p2536_p9, %p2530_p13 }
  0x46   : > { %2540 = shalt.err (!%p2537_p2)
}
  0x47   : > { %s2617_s25 = smov 128   ;;  %s2618_s11 = smov 8  }
  0x48   : > { %2396 = dma.hbm_to_vmem [thread:$0]  (!%p2773_p11), %s2771_s9, 4096, %s2777_s28, %s2779_s10, %s2617_s25, %s2617_s25, %s2618_s11  }
  0x49   : > { %p3664_p0 = scmp.ne.s32.totalorder %s3659_s23, 0 }
  0x4a   : > { %s2810_s12 = sand.u32 (!%p3664_p0), 1, %s2603_s16   ;;  %p3665_p5 = scmp.ne.s32.totalorder (!%p3664_p0), %s3657_s21, 0 }
  0x4b   : > { %206 = sbr.rel (%p3664_p0) target bundleno = 982 (0x3d6), region = 36  ;;  %s2199_s13 = sshll.u32 (!%p3664_p0), %s2810_s12, 8 }
  0x4c   : > { %s209_s14 = scalar_lea.sflag (!%p3664_p0), [#allocation4], %s2810_s12  ;;  %s2814_s20 = scalar_lea.vmem (!%p3664_p0), [#allocation3], %s2199_s13 }
  0x52   : > { %2586 = dma.done.wait (%p3665_p5), %s209_s14, 4096  }
  0x53   : > { %2588 = vsyncadd (%p3665_p5), %s209_s14, 4294963200  ;;  %p3666_p11 = scmp.eq.s32.totalorder %s2692_s19, 0 }
  0x55   : > { %2590 = dma.done.wait (%p3666_p11), [#allocation7], 1152   ;;  %p3667_p1 = pmov %p3666_p11 }
  0x56   : > { %v256_v0 = vld [vmem:[%s2814_s20] sm:$0xff]  ;;  %v257_v1 = vld [vmem:[%s2814_s20 + $0x8] sm:$0xff]  ;;  %v258_v2 = vld [vmem:[%s2814_s20 + $0x10] sm:$0xff]  ;;  %vm304_vm0 = vcmask 130048   ;;  %vm371_vm1 = vcmask 1041409   ;;  %vm374_vm2 = vcmask 1042434  }
  0x57   : > { %2592 = vsyncadd (%p3667_p1), [#allocation7], 4294966144  ;;  %v259_v3 = vld [vmem:[%s2814_s20 + $0x18] sm:$0xff]  ;;  %v260_v4 = vld [vmem:[%s2814_s20 + $0x20] sm:$0xff]  ;;  %v288_v6 = vpack.c.bf16 %v257_v1, %v256_v0  ;;  %vm377_vm3 = vcmask 1043459   ;;  %vm380_vm4 = vcmask 1044484  }
  0x58   : > { %v261_v5 = vld [vmem:[%s2814_s20 + $0x28] sm:$0xff]  ;;  %v262_v7 = vld [vmem:[%s2814_s20 + $0x30] sm:$0xff]  ;;  %v263_v8 = vld [vmem:[%s2814_s20 + $0x38] sm:$0xff]  ;;  %v289_v10 = vpack.c.bf16 %v259_v3, %v258_v2  ;;  %vm383_vm5 = vcmask 1045509   ;;  %vm386_vm6 = vcmask 1046534   ;;  %vm389_vm7 = vcmask 1047559  }
  0x59   : > { %v264_v9 = vld [vmem:[%s2814_s20 + $0x40] sm:$0xff]  ;;  %v290_v11 = vpack.c.bf16 %v261_v5, %v260_v4  ;;  %v265_v12 = vld [vmem:[%s2814_s20 + $0x48] sm:$0xff]  ;;  %v266_v13 = vld [vmem:[%s2814_s20 + $0x50] sm:$0xff]  ;;  %v291_v15 = vpack.c.bf16 %v263_v8, %v262_v7  ;;  %v2837_v16 = vsel %vm304_vm0, %v288_v6, 0  ;;  %s2619_s21 = smov 127   ;;  %s2620_s23 = smov 19  }
  0x5a   : > { %v267_v14 = vld [vmem:[%s2814_s20 + $0x58] sm:$0xff]  ;;  %v268_v17 = vld [vmem:[%s2814_s20 + $0x60] sm:$0xff]  ;;  %v269_v18 = vld [vmem:[%s2814_s20 + $0x68] sm:$0xff]  ;;  %v292_v20 = vpack.c.bf16 %v265_v12, %v264_v9  ;;  %v2843_v22 = vsel %vm304_vm0, %v289_v10, 0  ;;  %v2855_v29 = vunpack.c.l.b16 %v2837_v16  ;;  %s2621_s9 = smov 17   ;;  %s2622_s28 = smov 35  }
  0x5b   : > { %v270_v19 = vld [vmem:[%s2814_s20 + $0x70] sm:$0xff]  ;;  %v293_v21 = vpack.c.bf16 %v267_v14, %v266_v13  ;;  %v2846_v23 = vsel %vm304_vm0, %v290_v11, 0  ;;  %v271_v24 = vld [vmem:[%s2814_s20 + $0x78] sm:$0xff]  ;;  %v272_v25 = vld [vmem:[%s2814_s20 + $0x80] sm:$0xff]  ;;  %v294_v27 = vpack.c.bf16 %v269_v18, %v268_v17  ;;  %v2852_v28 = vsel %vm304_vm0, %v291_v15, 0  ;;  %s2623_s29 = smov 37  }
  0x5c   : > { %v273_v26 = vld [vmem:[%s2814_s20 + $0x88] sm:$0xff]  ;;  %v2858_v30 = vunpack.c.l.b16 %v2843_v22  ;;  %v274_v31 = vld [vmem:[%s2814_s20 + $0x90] sm:$0xff]  ;;  %v275_v32 = vld [vmem:[%s2814_s20 + $0x98] sm:$0xff]  ;;  %v295_v34 = vpack.c.bf16 %v271_v24, %v270_v19  ;;  %v2864_v36 = vsel %vm304_vm0, %v292_v20, 0  ;;  %v2876_v43 = vunpack.c.l.b16 %v2846_v23  ;;  %s2624_s10 = smov 53   ;;  %s2625_s6 = smov 55  }
  0x5d   : > { %v276_v33 = vld [vmem:[%s2814_s20 + $0xa0] sm:$0xff]  ;;  %v296_v35 = vpack.c.bf16 %v273_v26, %v272_v25  ;;  %v2867_v37 = vsel %vm304_vm0, %v293_v21, 0  ;;  %v277_v38 = vld [vmem:[%s2814_s20 + $0xa8] sm:$0xff]  ;;  %v278_v39 = vld [vmem:[%s2814_s20 + $0xb0] sm:$0xff]  ;;  %v297_v41 = vpack.c.bf16 %v275_v32, %v274_v31  ;;  %v2873_v42 = vsel %vm304_vm0, %v294_v27, 0  ;;  %s2626_s5 = smov 71  }
  0x5e   : > { %v279_v40 = vld [vmem:[%s2814_s20 + $0xb8] sm:$0xff]  ;;  %v2879_v44 = vunpack.c.l.b16 %v2852_v28  ;;  %v280_v45 = vld [vmem:[%s2814_s20 + $0xc0] sm:$0xff]  ;;  %v281_v46 = vld [vmem:[%s2814_s20 + $0xc8] sm:$0xff]  ;;  %v298_v48 = vpack.c.bf16 %v277_v38, %v276_v33  ;;  %v2885_v50 = vsel %vm304_vm0, %v295_v34, 0  ;;  %v2895_v57 = vunpack.c.l.b16 %v2864_v36  ;;  %s2627_s7 = smov 73   ;;  %s2628_s26 = smov 89  }
  0x5f   : > { %v282_v47 = vld [vmem:[%s2814_s20 + $0xd0] sm:$0xff]  ;;  %v299_v49 = vpack.c.bf16 %v279_v40, %v278_v39  ;;  %v2888_v51 = vsel %vm304_vm0, %v296_v35, 0  ;;  %v283_v52 = vld [vmem:[%s2814_s20 + $0xd8] sm:$0xff]  ;;  %v284_v53 = vld [vmem:[%s2814_s20 + $0xe0] sm:$0xff]  ;;  %v300_v55 = vpack.c.bf16 %v281_v46, %v280_v45  ;;  %v325_v56 = vsel %vm304_vm0, %v297_v41, 0  ;;  %s2629_s8 = smov 125  }
  0x60   : > { %v285_v54 = vld [vmem:[%s2814_s20 + $0xe8] sm:$0xff]  ;;  %v2898_v58 = vunpack.c.l.b16 %v2867_v37  ;;  %v286_v59 = vld [vmem:[%s2814_s20 + $0xf0] sm:$0xff]  ;;  %v287_v60 = vld [vmem:[%s2814_s20 + $0xf8] sm:$0xff]  ;;  %v301_v61 = vpack.c.bf16 %v283_v52, %v282_v47  ;;  %v327_v63 = vsel %vm304_vm0, %v298_v48, 0  ;;  %v2906_v3 = vunpack.c.l.b16 %v2873_v42  ;;  %s2630_s25 = smov 91   ;;  %s2631_s11 = smov 107  }
  0x61   : > { %v302_v62 = vpack.c.bf16 %v285_v54, %v284_v53  ;;  %v329_v0 = vsel %vm304_vm0, %v299_v49, 0  ;;  %v303_v1 = vpack.c.bf16 %v287_v60, %v286_v59  ;;  %v331_v2 = vsel %vm304_vm0, %v300_v55, 0  ;;  %s2632_s13 = smov 15   ;;  %s2633_s14 = smov 109  }
  0x62   : > { %v2909_v4 = vunpack.c.l.b16 %v2885_v50  ;;  %v333_v5 = vsel %vm304_vm0, %v301_v61, 0  ;;  %v2914_v7 = vunpack.c.l.b16 %v2888_v51  ;;  %v2916_v8 = vunpack.c.l.b16 %v325_v56  ;;  %s2635_s20 = smov 33   ;;  %p246_p4 = scmp.lt.s32.totalorder %s2692_s19, 1 }
  0x63   : > { %v335_v6 = vsel %vm304_vm0, %v302_v62, 0  ;;  %v337_v9 = vsel %vm304_vm0, %v303_v1, 0  ;;  %v2919_v10 = vunpack.c.l.b16 %v327_v63  ;;  %v2921_v11 = vunpack.c.l.b16 %v329_v0 }
  0x64   : > { %v2923_v12 = vunpack.c.l.b16 %v331_v2  ;;  %v2925_v13 = vunpack.c.l.b16 %v333_v5  ;;  %v2927_v14 = vunpack.c.l.b16 %v335_v6  ;;  %v2929_v15 = vunpack.c.l.b16 %v337_v9 }
  0x65   : > { %v581_v17 = vrot.slane %v2855_v29, 6  ;;  %v582_v18 = vrot.slane %v2858_v30, 5  ;;  %v584_v19 = vrot.slane %v2876_v43, 4  ;;  %v586_v20 = vrot.slane %v2879_v44, 3 }
  0x66   : > { %v588_v21 = vrot.slane %v2895_v57, 2  ;;  %v590_v24 = vrot.slane %v2898_v58, 1  ;;  %v593_v25 = vrot.slane %v2909_v4, 7  ;;  %v595_v26 = vrot.slane %v2914_v7, 6 }
  0x67   : > { %v596_v27 = vrot.slane %v2916_v8, 5  ;;  %v583_v31 = vsel %vm371_vm1, %v582_v18, %v581_v17  ;;  %v598_v32 = vrot.slane %v2919_v10, 4  ;;  %v600_v33 = vrot.slane %v2921_v11, 3 }
  0x68   : > { %v602_v34 = vrot.slane %v2923_v12, 2  ;;  %v585_v35 = vsel %vm374_vm2, %v584_v19, %v583_v31  ;;  %v604_v39 = vrot.slane %v2925_v13, 1  ;;  %v607_v40 = vrot.slane %v2929_v15, 7 }
  0x69   : > { %v597_v38 = vsel %vm371_vm1, %v596_v27, %v595_v26  ;;  %v587_v41 = vsel %vm377_vm3, %v586_v20, %v585_v35  ;;  %v2951_v46 = vunpack.c.h.b16 %v2843_v22  ;;  %v2954_v47 = vunpack.c.h.b16 %v2846_v23 }
  0x6a   : > { %v599_v45 = vsel %vm374_vm2, %v598_v32, %v597_v38  ;;  %v589_v48 = vsel %vm380_vm4, %v588_v21, %v587_v41  ;;  %v2959_v52 = vunpack.c.h.b16 %v2852_v28  ;;  %v2962_v53 = vunpack.c.h.b16 %v2864_v36 }
  0x6b   : > { %v601_v49 = vsel %vm377_vm3, %v600_v33, %v599_v45  ;;  %v591_v54 = vsel %vm383_vm5, %v590_v24, %v589_v48  ;;  %v2967_v22 = vunpack.c.h.b16 %v2867_v37  ;;  %v2970_v23 = vunpack.c.h.b16 %v2873_v42 }
  0x6c   : > { %v603_v55 = vsel %vm380_vm4, %v602_v34, %v601_v49  ;;  %v592_v59 = vsel %vm386_vm6, %v2906_v3, %v591_v54  ;;  %v2976_v28 = vunpack.c.h.b16 %v2885_v50  ;;  %v2978_v36 = vunpack.c.h.b16 %v325_v56 }
  0x6d   : > { %v605_v60 = vsel %vm383_vm5, %v604_v39, %v603_v55  ;;  %v594_v61 = vsel %vm389_vm7, %v593_v25, %v592_v59  ;;  %v2983_v37 = vunpack.c.h.b16 %v327_v63  ;;  %v2985_v1 = vunpack.c.h.b16 %v329_v0 }
  0x6e   : > { %v606_v62 = vsel %vm386_vm6, %v2927_v14, %v605_v60  ;;  %v2988_v17 = vunpack.c.h.b16 %v331_v2  ;;  %v2990_v18 = vunpack.c.h.b16 %v333_v5  ;;  %v2992_v19 = vunpack.c.h.b16 %v335_v6 }
  0x6f   : > { %v608_v42 = vsel %vm389_vm7, %v607_v40, %v606_v62  ;;  %v2994_v56 = vunpack.c.h.b16 %v337_v9  ;;  %v370_v20 = vrot.slane %v2858_v30, 7  ;;  %v373_v21 = vrot.slane %v2876_v43, 6 }
  0x70   : > { %v609_v50 = vpack.c.b16 %v608_v42, %v594_v61  ;;  %v376_v63 = vrot.slane %v2879_v44, 5  ;;  %v379_v0 = vrot.slane %v2895_v57, 4  ;;  %v382_v24 = vrot.slane %v2898_v58, 3 }
  0x71   : > { %v385_v2 = vrot.slane %v2906_v3, 2  ;;  %v372_v5 = vsel %vm371_vm1, %v370_v20, %v2855_v29  ;;  %v388_v6 = vrot.slane %v2909_v4, 1  ;;  %v391_v9 = vrot.slane %v2916_v8, 7 }
  0x72   : > { %610 = vrot.lane.b32.xlu0 %v609_v50, %s2619_s21  ;;  %v393_v25 = vrot.slane %v2919_v10, 6  ;;  %v375_v26 = vsel %vm374_vm2, %v373_v21, %v372_v5  ;;  %v395_v27 = vrot.slane %v2921_v11, 5  ;;  %v397_v31 = vrot.slane %v2923_v12, 4 }
  0x73   : > { %v399_v32 = vrot.slane %v2925_v13, 3  ;;  %v378_v33 = vsel %vm377_vm3, %v376_v63, %v375_v26  ;;  %v392_v34 = vsel %vm371_vm1, %v391_v9, %v2914_v7  ;;  %v401_v35 = vrot.slane %v2927_v14, 2 }
  0x74   : > { %v403_v38 = vrot.slane %v2929_v15, 1  ;;  %v381_v39 = vsel %vm380_vm4, %v379_v0, %v378_v33  ;;  %v394_v40 = vsel %vm374_vm2, %v393_v25, %v392_v34  ;;  %v617_v41 = vrot.slane %v2855_v29, 7 }
  0x75   : > { %v618_v45 = vrot.slane %v2858_v30, 6  ;;  %v384_v48 = vsel %vm383_vm5, %v382_v24, %v381_v39  ;;  %v396_v49 = vsel %vm377_vm3, %v395_v27, %v394_v40  ;;  %v620_v54 = vrot.slane %v2876_v43, 5 }
  0x76   : > { %v622_v55 = vrot.slane %v2879_v44, 4  ;;  %v387_v59 = vsel %vm386_vm6, %v385_v2, %v384_v48  ;;  %v398_v60 = vsel %vm380_vm4, %v397_v31, %v396_v49  ;;  %v624_v62 = vrot.slane %v2895_v57, 3 }
  0x77   : > { %v619_v61 = vsel %vm371_vm1, %v618_v45, %v617_v41  ;;  %v390_v42 = vsel %vm389_vm7, %v388_v6, %v387_v59  ;;  %v400_v50 = vsel %vm383_vm5, %v399_v32, %v398_v60  ;;  %v626_v21 = vrot.slane %v2898_v58, 2 }
  0x78   : > { %v621_v20 = vsel %vm374_vm2, %v620_v54, %v619_v61  ;;  %v402_v63 = vsel %vm386_vm6, %v401_v35, %v400_v50  ;;  %v628_v24 = vrot.slane %v2906_v3, 1  ;;  %v631_v2 = vrot.slane %v2914_v7, 7 }
  0x79   : > { %v623_v0 = vsel %vm377_vm3, %v622_v55, %v621_v20  ;;  %v404_v5 = vsel %vm389_vm7, %v403_v38, %v402_v63  ;;  %v632_v6 = vrot.slane %v2916_v8, 6  ;;  %v634_v25 = vrot.slane %v2919_v10, 5 }
  0x7a   : > { %v625_v9 = vsel %vm380_vm4, %v624_v62, %v623_v0  ;;  %v405_v26 = vpack.c.b16 %v404_v5, %v390_v42  ;;  %v636_v31 = vrot.slane %v2921_v11, 4  ;;  %v638_v32 = vrot.slane %v2923_v12, 3 }
  0x7b   : > { %v627_v27 = vsel %vm383_vm5, %v626_v21, %v625_v9  ;;  %v633_v34 = vsel %vm371_vm1, %v632_v6, %v631_v2  ;;  %v640_v35 = vrot.slane %v2925_v13, 2  ;;  %v642_v38 = vrot.slane %v2927_v14, 1 }
  0x7c   : > { %v629_v33 = vsel %vm386_vm6, %v628_v24, %v627_v27  ;;  %406 = vrot.lane.b32.xlu1 %v405_v26, %s2620_s23  ;;  %v635_v40 = vsel %vm374_vm2, %v634_v25, %v633_v34  ;;  %v3052_v41 = vunpack.c.h.b16 %v2837_v16  ;;  %v3055_v45 = vunpack.c.h.b16 %v2888_v51  ;;  %s2638_s23 = smov 126  }
  0x7d   : > { %v630_v39 = vsel %vm389_vm7, %v2909_v4, %v629_v33  ;;  %v637_v48 = vsel %vm377_vm3, %v636_v31, %v635_v40  ;;  %v667_v49 = vrot.slane %v2951_v46, 7  ;;  %v669_v54 = vrot.slane %v2954_v47, 6 }
  0x7e   : > { %v671_v55 = vrot.slane %v2959_v52, 5  ;;  %v639_v59 = vsel %vm380_vm4, %v638_v32, %v637_v48  ;;  %v673_v60 = vrot.slane %v2962_v53, 4  ;;  %v675_v61 = vrot.slane %v2967_v22, 3 }
  0x7f   : > { %v677_v16 = vrot.slane %v2970_v23, 2  ;;  %v641_v62 = vsel %vm383_vm5, %v640_v35, %v639_v59  ;;  %v668_v51 = vsel %vm371_vm1, %v667_v49, %v3052_v41  ;;  %v679_v42 = vrot.slane %v2976_v28, 1 }
  0x80   : > { %v681_v50 = vrot.slane %v2978_v36, 7  ;;  %v643_v20 = vsel %vm386_vm6, %v642_v38, %v641_v62  ;;  %v670_v21 = vsel %vm374_vm2, %v669_v54, %v668_v51  ;;  %v683_v63 = vrot.slane %v2983_v37, 6 }
  0x81   : > { %v685_v0 = vrot.slane %v2985_v1, 5  ;;  %v644_v24 = vsel %vm389_vm7, %v2929_v15, %v643_v20  ;;  %v672_v2 = vsel %vm377_vm3, %v671_v55, %v670_v21  ;;  %v687_v9 = vrot.slane %v2988_v17, 4 }
  0x82   : > { %v682_v5 = vsel %vm371_vm1, %v681_v50, %v3055_v45  ;;  %v645_v6 = vpack.c.b16 %v644_v24, %v630_v39  ;;  %v674_v25 = vsel %vm380_vm4, %v673_v60, %v672_v2  ;;  %v689_v27 = vrot.slane %v2990_v18, 3 }
  0x83   : > { %v684_v26 = vsel %vm374_vm2, %v683_v63, %v682_v5  ;;  %v676_v31 = vsel %vm383_vm5, %v675_v61, %v674_v25  ;;  %v691_v33 = vrot.slane %v2992_v19, 2  ;;  %v693_v34 = vrot.slane %v2994_v56, 1 }
  0x84   : > { %v686_v32 = vsel %vm377_vm3, %v685_v0, %v684_v26  ;;  %646 = vrot.lane.b32.xlu0 %v645_v6, %s2621_s9  ;;  %v678_v35 = vsel %vm386_vm6, %v677_v16, %v676_v31  ;;  %v411_v39 = vrot.slane %v2855_v29, 1  ;;  %v413_v40 = vrot.slane %v2876_v43, 7  ;;  %s2639_s9 = smov 110  }
  0x85   : > { %v688_v38 = vsel %vm380_vm4, %v687_v9, %v686_v32  ;;  %v680_v48 = vsel %vm389_vm7, %v679_v42, %v678_v35  ;;  %v415_v54 = vrot.slane %v2879_v44, 6  ;;  %v417_v55 = vrot.slane %v2895_v57, 5 }
  0x86   : > { %v690_v49 = vsel %vm383_vm5, %v689_v27, %v688_v38  ;;  %v412_v60 = vsel %vm371_vm1, %v2858_v30, %v411_v39  ;;  %v419_v61 = vrot.slane %v2898_v58, 4  ;;  %v421_v16 = vrot.slane %v2906_v3, 3 }
  0x87   : > { %v692_v59 = vsel %vm386_vm6, %v691_v33, %v690_v49  ;;  %v414_v51 = vsel %vm374_vm2, %v413_v40, %v412_v60  ;;  %v423_v42 = vrot.slane %v2909_v4, 2  ;;  %v425_v50 = vrot.slane %v2914_v7, 1 }
  0x88   : > { %v694_v62 = vsel %vm389_vm7, %v693_v34, %v692_v59  ;;  %v416_v21 = vsel %vm377_vm3, %v415_v54, %v414_v51  ;;  %v427_v63 = vrot.slane %v2919_v10, 7  ;;  %v429_v0 = vrot.slane %v2921_v11, 6 }
  0x89   : > { %v695_v20 = vpack.c.b16 %v694_v62, %v680_v48  ;;  %v418_v24 = vsel %vm380_vm4, %v417_v55, %v416_v21  ;;  %v426_v2 = vsel %vm371_vm1, %v2916_v8, %v425_v50  ;;  %v431_v5 = vrot.slane %v2923_v12, 5 }
  0x8a   : > { %v433_v9 = vrot.slane %v2925_v13, 4  ;;  %v420_v6 = vsel %vm383_vm5, %v419_v61, %v418_v24  ;;  %v428_v25 = vsel %vm374_vm2, %v427_v63, %v426_v2  ;;  %v435_v26 = vrot.slane %v2927_v14, 3 }
  0x8b   : > { %696 = vrot.lane.b32.xlu1 %v695_v20, %s2622_s28  ;;  %v437_v27 = vrot.slane %v2929_v15, 2  ;;  %v422_v31 = vsel %vm386_vm6, %v421_v16, %v420_v6  ;;  %v430_v32 = vsel %vm377_vm3, %v429_v0, %v428_v25  ;;  %v701_v33 = vrot.slane %v3052_v41, 1  ;;  %s2640_s28 = smov 108  }
  0x8c   : > { %v703_v34 = vrot.slane %v2954_v47, 7  ;;  %v424_v35 = vsel %vm389_vm7, %v423_v42, %v422_v31  ;;  %v432_v38 = vsel %vm380_vm4, %v431_v5, %v430_v32  ;;  %v705_v39 = vrot.slane %v2959_v52, 6 }
  0x8d   : > { %v707_v40 = vrot.slane %v2962_v53, 5  ;;  %v434_v48 = vsel %vm383_vm5, %v433_v9, %v432_v38  ;;  %v702_v49 = vsel %vm371_vm1, %v2951_v46, %v701_v33  ;;  %v709_v54 = vrot.slane %v2967_v22, 4 }
  0x8e   : > { %v711_v55 = vrot.slane %v2970_v23, 3  ;;  %v436_v59 = vsel %vm386_vm6, %v435_v26, %v434_v48  ;;  %v704_v60 = vsel %vm374_vm2, %v703_v34, %v702_v49  ;;  %v713_v61 = vrot.slane %v2976_v28, 2 }
  0x8f   : > { %v715_v16 = vrot.slane %v3055_v45, 1  ;;  %v438_v62 = vsel %vm389_vm7, %v437_v27, %v436_v59  ;;  %v706_v51 = vsel %vm377_vm3, %v705_v39, %v704_v60  ;;  %v717_v42 = vrot.slane %v2983_v37, 7 }
  0x90   : > { %v719_v50 = vrot.slane %v2985_v1, 6  ;;  %v439_v20 = vpack.c.b16 %v438_v62, %v424_v35  ;;  %v708_v21 = vsel %vm380_vm4, %v707_v40, %v706_v51  ;;  %v721_v0 = vrot.slane %v2988_v17, 5 }
  0x91   : > { %v716_v63 = vsel %vm371_vm1, %v2978_v36, %v715_v16  ;;  %v710_v24 = vsel %vm383_vm5, %v709_v54, %v708_v21  ;;  %v723_v5 = vrot.slane %v2990_v18, 4  ;;  %v725_v9 = vrot.slane %v2992_v19, 3 }
  0x92   : > { %v718_v2 = vsel %vm374_vm2, %v717_v42, %v716_v63  ;;  %440 = vrot.lane.b32.xlu0 %v439_v20, %s2623_s29  ;;  %v712_v6 = vsel %vm386_vm6, %v711_v55, %v710_v24  ;;  %v727_v26 = vrot.slane %v2994_v56, 2  ;;  %v445_v27 = vrot.slane %v2855_v29, 2  ;;  %s2641_s29 = smov 92  }
  0x93   : > { %v720_v25 = vsel %vm377_vm3, %v719_v50, %v718_v2  ;;  %v714_v31 = vsel %vm389_vm7, %v713_v61, %v712_v6  ;;  %v446_v33 = vrot.slane %v2858_v30, 1  ;;  %v449_v34 = vrot.slane %v2879_v44, 7 }
  0x94   : > { %v722_v32 = vsel %vm380_vm4, %v721_v0, %v720_v25  ;;  %v451_v38 = vrot.slane %v2895_v57, 6  ;;  %v453_v39 = vrot.slane %v2898_v58, 5  ;;  %v455_v40 = vrot.slane %v2906_v3, 4 }
  0x95   : > { %v724_v35 = vsel %vm383_vm5, %v723_v5, %v722_v32  ;;  %v447_v49 = vsel %vm371_vm1, %v446_v33, %v445_v27  ;;  %v457_v54 = vrot.slane %v2909_v4, 3  ;;  %v459_v55 = vrot.slane %v2914_v7, 2 }
  0x96   : > { %v726_v48 = vsel %vm386_vm6, %v725_v9, %v724_v35  ;;  %v448_v60 = vsel %vm374_vm2, %v2876_v43, %v447_v49  ;;  %v460_v61 = vrot.slane %v2916_v8, 1  ;;  %v463_v16 = vrot.slane %v2921_v11, 7 }
  0x97   : > { %v728_v59 = vsel %vm389_vm7, %v727_v26, %v726_v48  ;;  %v450_v51 = vsel %vm377_vm3, %v449_v34, %v448_v60  ;;  %v465_v42 = vrot.slane %v2923_v12, 6  ;;  %v467_v50 = vrot.slane %v2925_v13, 5 }
  0x98   : > { %v729_v62 = vpack.c.b16 %v728_v59, %v714_v31  ;;  %v452_v20 = vsel %vm380_vm4, %v451_v38, %v450_v51  ;;  %v461_v21 = vsel %vm371_vm1, %v460_v61, %v459_v55  ;;  %v469_v63 = vrot.slane %v2927_v14, 4 }
  0x99   : > { %v471_v0 = vrot.slane %v2929_v15, 3  ;;  %v454_v24 = vsel %vm383_vm5, %v453_v39, %v452_v20  ;;  %v462_v2 = vsel %vm374_vm2, %v2919_v10, %v461_v21  ;;  %v735_v5 = vrot.slane %v3052_v41, 2 }
  0x9a   : > { %730 = vrot.lane.b32.xlu1 %v729_v62, %s2624_s10  ;;  %v736_v9 = vrot.slane %v2951_v46, 1  ;;  %v456_v6 = vsel %vm386_vm6, %v455_v40, %v454_v24  ;;  %v464_v25 = vsel %vm377_vm3, %v463_v16, %v462_v2  ;;  %v739_v26 = vrot.slane %v2959_v52, 7 }
  0x9b   : > { %v741_v27 = vrot.slane %v2962_v53, 6  ;;  %v458_v31 = vsel %vm389_vm7, %v457_v54, %v456_v6  ;;  %v466_v32 = vsel %vm380_vm4, %v465_v42, %v464_v25  ;;  %v743_v34 = vrot.slane %v2967_v22, 5 }
  0x9c   : > { %v737_v33 = vsel %vm371_vm1, %v736_v9, %v735_v5  ;;  %v468_v35 = vsel %vm383_vm5, %v467_v50, %v466_v32  ;;  %v745_v39 = vrot.slane %v2970_v23, 4  ;;  %v747_v40 = vrot.slane %v2976_v28, 3 }
  0x9d   : > { %v738_v38 = vsel %vm374_vm2, %v2954_v47, %v737_v33  ;;  %v470_v48 = vsel %vm386_vm6, %v469_v63, %v468_v35  ;;  %v749_v54 = vrot.slane %v3055_v45, 2  ;;  %v750_v55 = vrot.slane %v2978_v36, 1 }
  0x9e   : > { %v740_v49 = vsel %vm377_vm3, %v739_v26, %v738_v38  ;;  %v472_v59 = vsel %vm389_vm7, %v471_v0, %v470_v48  ;;  %v753_v61 = vrot.slane %v2985_v1, 7  ;;  %v755_v16 = vrot.slane %v2988_v17, 6 }
  0x9f   : > { %v742_v60 = vsel %vm380_vm4, %v741_v27, %v740_v49  ;;  %v473_v62 = vpack.c.b16 %v472_v59, %v458_v31  ;;  %v751_v42 = vsel %vm371_vm1, %v750_v55, %v749_v54  ;;  %v757_v50 = vrot.slane %v2990_v18, 5 }
  0xa0   : > { %v744_v51 = vsel %vm383_vm5, %v743_v34, %v742_v60  ;;  %v752_v21 = vsel %vm374_vm2, %v2983_v37, %v751_v42  ;;  %v759_v63 = vrot.slane %v2992_v19, 4  ;;  %v761_v0 = vrot.slane %v2994_v56, 3 }
  0xa1   : > { %v746_v20 = vsel %vm386_vm6, %v745_v39, %v744_v51  ;;  %474 = vrot.lane.b32.xlu0 %v473_v62, %s2625_s6  ;;  %v754_v2 = vsel %vm377_vm3, %v753_v61, %v752_v21  ;;  %v479_v5 = vrot.slane %v2855_v29, 3  ;;  %v480_v9 = vrot.slane %v2858_v30, 2 }
  0xa2   : > { %v748_v24 = vsel %vm389_vm7, %v747_v40, %v746_v20  ;;  %v756_v6 = vsel %vm380_vm4, %v755_v16, %v754_v2  ;;  %v482_v25 = vrot.slane %v2876_v43, 1  ;;  %v485_v26 = vrot.slane %v2895_v57, 7 }
  0xa3   : > { %v487_v27 = vrot.slane %v2898_v58, 6  ;;  %v758_v31 = vsel %vm383_vm5, %v757_v50, %v756_v6  ;;  %v481_v32 = vsel %vm371_vm1, %v480_v9, %v479_v5  ;;  %v489_v33 = vrot.slane %v2906_v3, 5 }
  0xa4   : > { %v491_v34 = vrot.slane %v2909_v4, 4  ;;  %v760_v35 = vsel %vm386_vm6, %v759_v63, %v758_v31  ;;  %v483_v38 = vsel %vm374_vm2, %v482_v25, %v481_v32  ;;  %v493_v39 = vrot.slane %v2914_v7, 3 }
  0xa5   : > { %v494_v40 = vrot.slane %v2916_v8, 2  ;;  %v762_v48 = vsel %vm389_vm7, %v761_v0, %v760_v35  ;;  %v484_v49 = vsel %vm377_vm3, %v2879_v44, %v483_v38  ;;  %v496_v54 = vrot.slane %v2919_v10, 1 }
  0xa6   : > { %v499_v55 = vrot.slane %v2923_v12, 7  ;;  %v763_v59 = vpack.c.b16 %v762_v48, %v748_v24  ;;  %v486_v60 = vsel %vm380_vm4, %v485_v26, %v484_v49  ;;  %v501_v16 = vrot.slane %v2925_v13, 6 }
  0xa7   : > { %v495_v61 = vsel %vm371_vm1, %v494_v40, %v493_v39  ;;  %v488_v62 = vsel %vm383_vm5, %v487_v27, %v486_v60  ;;  %v503_v42 = vrot.slane %v2927_v14, 5  ;;  %v505_v50 = vrot.slane %v2929_v15, 4 }
  0xa8   : > { %v497_v51 = vsel %vm374_vm2, %v496_v54, %v495_v61  ;;  %764 = vrot.lane.b32.xlu1 %v763_v59, %s2626_s5  ;;  %v490_v20 = vsel %vm386_vm6, %v489_v33, %v488_v62  ;;  %v769_v63 = vrot.slane %v3052_v41, 3  ;;  %v770_v0 = vrot.slane %v2951_v46, 2  ;;  %s247_s5 = scalar_select %p246_p4, %s2692_s19, 1 }
  0xa9   : > { %v498_v21 = vsel %vm377_vm3, %v2921_v11, %v497_v51  ;;  %v492_v24 = vsel %vm389_vm7, %v491_v34, %v490_v20  ;;  %v772_v5 = vrot.slane %v2954_v47, 1  ;;  %v775_v9 = vrot.slane %v2962_v53, 7 }
  0xaa   : > { %v500_v2 = vsel %vm380_vm4, %v499_v55, %v498_v21  ;;  %v771_v25 = vsel %vm371_vm1, %v770_v0, %v769_v63  ;;  %v777_v26 = vrot.slane %v2967_v22, 6  ;;  %v779_v27 = vrot.slane %v2970_v23, 5 }
  0xab   : > { %v502_v6 = vsel %vm383_vm5, %v501_v16, %v500_v2  ;;  %v773_v32 = vsel %vm374_vm2, %v772_v5, %v771_v25  ;;  %v781_v33 = vrot.slane %v2976_v28, 4  ;;  %v783_v34 = vrot.slane %v3055_v45, 3 }
  0xac   : > { %v504_v31 = vsel %vm386_vm6, %v503_v42, %v502_v6  ;;  %v774_v38 = vsel %vm377_vm3, %v2959_v52, %v773_v32  ;;  %v784_v39 = vrot.slane %v2978_v36, 2  ;;  %v786_v40 = vrot.slane %v2983_v37, 1 }
  0xad   : > { %v506_v35 = vsel %vm389_vm7, %v505_v50, %v504_v31  ;;  %v776_v49 = vsel %vm380_vm4, %v775_v9, %v774_v38  ;;  %v789_v54 = vrot.slane %v2988_v17, 7  ;;  %v791_v55 = vrot.slane %v2990_v18, 6 }
  0xae   : > { %v507_v48 = vpack.c.b16 %v506_v35, %v492_v24  ;;  %v778_v59 = vsel %vm383_vm5, %v777_v26, %v776_v49  ;;  %v785_v60 = vsel %vm371_vm1, %v784_v39, %v783_v34  ;;  %v793_v61 = vrot.slane %v2992_v19, 5 }
  0xaf   : > { %v795_v16 = vrot.slane %v2994_v56, 4  ;;  %v780_v62 = vsel %vm386_vm6, %v779_v27, %v778_v59  ;;  %v787_v51 = vsel %vm374_vm2, %v786_v40, %v785_v60  ;;  %v837_v42 = vrot.slane %v3052_v41, 5 }
  0xb0   : > { %508 = vrot.lane.b32.xlu0 %v507_v48, %s2627_s7  ;;  %v838_v50 = vrot.slane %v2951_v46, 4  ;;  %v782_v20 = vsel %vm389_vm7, %v781_v33, %v780_v62  ;;  %v788_v21 = vsel %vm377_vm3, %v2985_v1, %v787_v51  ;;  %v840_v63 = vrot.slane %v2954_v47, 3  ;;  %s2238_s7 = sshll.u32 %s247_s5, 4 }
  0xb1   : > { %v842_v0 = vrot.slane %v2959_v52, 2  ;;  %v790_v24 = vsel %vm380_vm4, %v789_v54, %v788_v21  ;;  %v844_v5 = vrot.slane %v2962_v53, 1  ;;  %v847_v9 = vrot.slane %v2970_v23, 7 }
  0xb2   : > { %v839_v2 = vsel %vm371_vm1, %v838_v50, %v837_v42  ;;  %v792_v6 = vsel %vm383_vm5, %v791_v55, %v790_v24  ;;  %v849_v26 = vrot.slane %v2976_v28, 6  ;;  %v851_v27 = vrot.slane %v3055_v45, 5 }
  0xb3   : > { %v841_v25 = vsel %vm374_vm2, %v840_v63, %v839_v2  ;;  %v794_v31 = vsel %vm386_vm6, %v793_v61, %v792_v6  ;;  %v852_v33 = vrot.slane %v2978_v36, 4  ;;  %v854_v34 = vrot.slane %v2983_v37, 3 }
  0xb4   : > { %v843_v32 = vsel %vm377_vm3, %v842_v0, %v841_v25  ;;  %v796_v35 = vsel %vm389_vm7, %v795_v16, %v794_v31  ;;  %v856_v39 = vrot.slane %v2985_v1, 2  ;;  %v858_v40 = vrot.slane %v2988_v17, 1 }
  0xb5   : > { %v845_v38 = vsel %vm380_vm4, %v844_v5, %v843_v32  ;;  %v797_v48 = vpack.c.b16 %v796_v35, %v782_v20  ;;  %v853_v54 = vsel %vm371_vm1, %v852_v33, %v851_v27  ;;  %v861_v55 = vrot.slane %v2992_v19, 7 }
  0xb6   : > { %v846_v49 = vsel %vm383_vm5, %v2967_v22, %v845_v38  ;;  %v855_v60 = vsel %vm374_vm2, %v854_v34, %v853_v54  ;;  %v863_v61 = vrot.slane %v2994_v56, 6  ;;  %v513_v16 = vrot.slane %v2855_v29, 4 }
  0xb7   : > { %v848_v59 = vsel %vm386_vm6, %v847_v9, %v846_v49  ;;  %798 = vrot.lane.b32.xlu1 %v797_v48, %s2628_s26  ;;  %v857_v51 = vsel %vm377_vm3, %v856_v39, %v855_v60  ;;  %v514_v42 = vrot.slane %v2858_v30, 3  ;;  %v516_v50 = vrot.slane %v2876_v43, 2 }
  0xb8   : > { %v850_v62 = vsel %vm389_vm7, %v849_v26, %v848_v59  ;;  %v859_v20 = vsel %vm380_vm4, %v858_v40, %v857_v51  ;;  %v518_v21 = vrot.slane %v2879_v44, 1  ;;  %v521_v63 = vrot.slane %v2898_v58, 7 }
  0xb9   : > { %v523_v0 = vrot.slane %v2906_v3, 6  ;;  %v860_v24 = vsel %vm383_vm5, %v2990_v18, %v859_v20  ;;  %v515_v2 = vsel %vm371_vm1, %v514_v42, %v513_v16  ;;  %v525_v5 = vrot.slane %v2909_v4, 5 }
  0xba   : > { %v527_v9 = vrot.slane %v2914_v7, 4  ;;  %v862_v6 = vsel %vm386_vm6, %v861_v55, %v860_v24  ;;  %v517_v25 = vsel %vm374_vm2, %v516_v50, %v515_v2  ;;  %v528_v26 = vrot.slane %v2916_v8, 3 }
  0xbb   : > { %v530_v27 = vrot.slane %v2919_v10, 2  ;;  %v864_v31 = vsel %vm389_vm7, %v863_v61, %v862_v6  ;;  %v519_v32 = vsel %vm377_vm3, %v518_v21, %v517_v25  ;;  %v532_v33 = vrot.slane %v2921_v11, 1 }
  0xbc   : > { %v535_v34 = vrot.slane %v2925_v13, 7  ;;  %v865_v35 = vpack.c.b16 %v864_v31, %v850_v62  ;;  %v520_v38 = vsel %vm380_vm4, %v2895_v57, %v519_v32  ;;  %v529_v39 = vsel %vm371_vm1, %v528_v26, %v527_v9 }
  0xbd   : > { %v537_v40 = vrot.slane %v2927_v14, 6  ;;  %v522_v48 = vsel %vm383_vm5, %v521_v63, %v520_v38  ;;  %v531_v49 = vsel %vm374_vm2, %v530_v27, %v529_v39  ;;  %v539_v54 = vrot.slane %v2929_v15, 5 }
  0xbe   : > { %v803_v55 = vrot.slane %v3052_v41, 4  ;;  %866 = vrot.lane.b32.xlu0 %v865_v35, %s2629_s8  ;;  %v524_v59 = vsel %vm386_vm6, %v523_v0, %v522_v48  ;;  %v533_v60 = vsel %vm377_vm3, %v532_v33, %v531_v49  ;;  %v804_v61 = vrot.slane %v2951_v46, 3 }
  0xbf   : > { %v806_v16 = vrot.slane %v2954_v47, 2  ;;  %v526_v62 = vsel %vm389_vm7, %v525_v5, %v524_v59  ;;  %v534_v51 = vsel %vm380_vm4, %v2923_v12, %v533_v60  ;;  %v808_v42 = vrot.slane %v2959_v52, 1 }
  0xc0   : > { %v811_v50 = vrot.slane %v2967_v22, 7  ;;  %v536_v20 = vsel %vm383_vm5, %v535_v34, %v534_v51  ;;  %v805_v21 = vsel %vm371_vm1, %v804_v61, %v803_v55  ;;  %v813_v63 = vrot.slane %v2970_v23, 6 }
  0xc1   : > { %v815_v0 = vrot.slane %v2976_v28, 5  ;;  %v538_v24 = vsel %vm386_vm6, %v537_v40, %v536_v20  ;;  %v807_v2 = vsel %vm374_vm2, %v806_v16, %v805_v21  ;;  %v817_v5 = vrot.slane %v3055_v45, 4 }
  0xc2   : > { %v818_v9 = vrot.slane %v2978_v36, 3  ;;  %v540_v6 = vsel %vm389_vm7, %v539_v54, %v538_v24  ;;  %v809_v25 = vsel %vm377_vm3, %v808_v42, %v807_v2  ;;  %v820_v26 = vrot.slane %v2983_v37, 2 }
  0xc3   : > { %v822_v27 = vrot.slane %v2985_v1, 1  ;;  %v541_v31 = vpack.c.b16 %v540_v6, %v526_v62  ;;  %v810_v32 = vsel %vm380_vm4, %v2962_v53, %v809_v25  ;;  %v825_v34 = vrot.slane %v2990_v18, 7 }
  0xc4   : > { %v819_v33 = vsel %vm371_vm1, %v818_v9, %v817_v5  ;;  %v812_v35 = vsel %vm383_vm5, %v811_v50, %v810_v32  ;;  %v827_v39 = vrot.slane %v2992_v19, 6  ;;  %v829_v40 = vrot.slane %v2994_v56, 5 }
  0xc5   : > { %v821_v38 = vsel %vm374_vm2, %v820_v26, %v819_v33  ;;  %542 = vrot.lane.b32.xlu1 %v541_v31, %s2630_s25  ;;  %v814_v48 = vsel %vm386_vm6, %v813_v63, %v812_v35  ;;  %v873_v54 = vrot.slane %v3052_v41, 6  ;;  %v874_v55 = vrot.slane %v2951_v46, 5 }
  0xc6   : > { %v823_v49 = vsel %vm377_vm3, %v822_v27, %v821_v38  ;;  %v816_v59 = vsel %vm389_vm7, %v815_v0, %v814_v48  ;;  %v876_v61 = vrot.slane %v2954_v47, 4  ;;  %v878_v16 = vrot.slane %v2959_v52, 3 }
  0xc7   : > { %v824_v60 = vsel %vm380_vm4, %v2988_v17, %v823_v49  ;;  %v875_v51 = vsel %vm371_vm1, %v874_v55, %v873_v54  ;;  %v880_v42 = vrot.slane %v2962_v53, 2  ;;  %v882_v50 = vrot.slane %v2967_v22, 1 }
  0xc8   : > { %v826_v62 = vsel %vm383_vm5, %v825_v34, %v824_v60  ;;  %v877_v21 = vsel %vm374_vm2, %v876_v61, %v875_v51  ;;  %v885_v63 = vrot.slane %v2976_v28, 7  ;;  %v887_v0 = vrot.slane %v3055_v45, 6 }
  0xc9   : > { %v828_v20 = vsel %vm386_vm6, %v827_v39, %v826_v62  ;;  %v879_v2 = vsel %vm377_vm3, %v878_v16, %v877_v21  ;;  %v888_v5 = vrot.slane %v2978_v36, 5  ;;  %v890_v9 = vrot.slane %v2983_v37, 4 }
  0xca   : > { %v830_v24 = vsel %vm389_vm7, %v829_v40, %v828_v20  ;;  %v881_v25 = vsel %vm380_vm4, %v880_v42, %v879_v2  ;;  %v892_v26 = vrot.slane %v2985_v1, 3  ;;  %v894_v27 = vrot.slane %v2988_v17, 2 }
  0xcb   : > { %v831_v6 = vpack.c.b16 %v830_v24, %v816_v59  ;;  %v883_v31 = vsel %vm383_vm5, %v882_v50, %v881_v25  ;;  %v889_v32 = vsel %vm371_vm1, %v888_v5, %v887_v0  ;;  %v896_v33 = vrot.slane %v2990_v18, 1 }
  0xcc   : > { %v899_v34 = vrot.slane %v2994_v56, 7  ;;  %v884_v35 = vsel %vm386_vm6, %v2970_v23, %v883_v31  ;;  %v891_v38 = vsel %vm374_vm2, %v890_v9, %v889_v32  ;;  %v547_v39 = vrot.slane %v2855_v29, 5 }
  0xcd   : > { %832 = vrot.lane.b32.xlu0 %v831_v6, %s2631_s11  ;;  %v548_v40 = vrot.slane %v2858_v30, 4  ;;  %v886_v48 = vsel %vm389_vm7, %v885_v63, %v884_v35  ;;  %v893_v49 = vsel %vm377_vm3, %v892_v26, %v891_v38  ;;  %v550_v54 = vrot.slane %v2876_v43, 3  ;;  %s2379_s11 = smul.u32 24, %s2810_s12 }
  0xce   : > { %v552_v55 = vrot.slane %v2879_v44, 2  ;;  %v895_v59 = vsel %vm380_vm4, %v894_v27, %v893_v49  ;;  %v554_v61 = vrot.slane %v2895_v57, 1  ;;  %v557_v16 = vrot.slane %v2906_v3, 7 }
  0xcf   : > { %v549_v60 = vsel %vm371_vm1, %v548_v40, %v547_v39  ;;  %v897_v29 = vsel %vm383_vm5, %v896_v33, %v895_v59  ;;  %v559_v62 = vrot.slane %v2909_v4, 6  ;;  %v561_v51 = vrot.slane %v2914_v7, 5 }
  0xd0   : > { %v551_v30 = vsel %vm374_vm2, %v550_v54, %v549_v60  ;;  %v898_v43 = vsel %vm386_vm6, %v2992_v19, %v897_v29  ;;  %v562_v42 = vrot.slane %v2916_v8, 4  ;;  %v564_v50 = vrot.slane %v2919_v10, 3 }
  0xd1   : > { %v553_v44 = vsel %vm377_vm3, %v552_v55, %v551_v30  ;;  %v900_v57 = vsel %vm389_vm7, %v899_v34, %v898_v43  ;;  %v566_v20 = vrot.slane %v2921_v11, 2  ;;  %v568_v21 = vrot.slane %v2923_v12, 1 }
  0xd2   : > { %v555_v3 = vsel %vm380_vm4, %v554_v61, %v553_v44  ;;  %v901_v4 = vpack.c.b16 %v900_v57, %v886_v48  ;;  %v563_v63 = vsel %vm371_vm1, %v562_v42, %v561_v51  ;;  %v571_v0 = vrot.slane %v2927_v14, 7 }
  0xd3   : > { %v556_v7 = vsel %vm383_vm5, %v2898_v58, %v555_v3  ;;  %v565_v10 = vsel %vm374_vm2, %v564_v50, %v563_v63  ;;  %v573_v24 = vrot.slane %v2929_v15, 6  ;;  %v907_v2 = vrot.slane %v3052_v41, 7 }
  0xd4   : > { %v558_v8 = vsel %vm386_vm6, %v557_v16, %v556_v7  ;;  %902 = vrot.lane.b32.xlu1 %v901_v4, %s2632_s13  ;;  %v567_v12 = vsel %vm377_vm3, %v566_v20, %v565_v10  ;;  %v908_v58 = vrot.slane %v2951_v46, 6  ;;  %v910_v5 = vrot.slane %v2954_v47, 5  ;;  %s2380_s13 = smul.u32 384, %s2692_s19  ;;  %s2083_s19 = scalar_lea.sflag [#allocation5], %s2810_s12 }
  0xd5   : > { %v560_v11 = vsel %vm389_vm7, %v559_v62, %v558_v8  ;;  %v569_v14 = vsel %vm380_vm4, %v568_v21, %v567_v12  ;;  %v912_v9 = vrot.slane %v2959_v52, 4  ;;  %v914_v6 = vrot.slane %v2962_v53, 3  ;;  %v2470_v8 = vld [vmem:[#allocation6 + $0x8] sm:$0xff]  }
  0xd6   : > { %v916_v15 = vrot.slane %v2967_v22, 2  ;;  %v570_v41 = vsel %vm383_vm5, %v2925_v13, %v569_v14  ;;  %v909_v25 = vsel %vm371_vm1, %v908_v58, %v907_v2  ;;  %v918_v26 = vrot.slane %v2970_v23, 1  ;;  %v2471_v58 = vld [vmem:[#allocation6] sm:$0xff]  }
  0xd7   : > { %v921_v27 = vrot.slane %v3055_v45, 7  ;;  %v572_v46 = vsel %vm386_vm6, %v571_v0, %v570_v41  ;;  %v911_v47 = vsel %vm374_vm2, %v910_v5, %v909_v25  ;;  %v922_v31 = vrot.slane %v2978_v36, 6  ;;  %v2472_v41 = vld [vmem:[#allocation6 + $0x10] sm:$0xff]  }
  0xd8   : > { %v924_v52 = vrot.slane %v2983_v37, 5  ;;  %v574_v53 = vsel %vm389_vm7, %v573_v24, %v572_v46  ;;  %v913_v22 = vsel %vm377_vm3, %v912_v9, %v911_v47  ;;  %v926_v13 = vrot.slane %v2985_v1, 4 }
  0xd9   : > { %v928_v32 = vrot.slane %v2988_v17, 3  ;;  %v575_v33 = vpack.c.b16 %v574_v53, %v560_v11  ;;  %v915_v23 = vsel %vm380_vm4, %v914_v6, %v913_v22  ;;  %v923_v45 = vsel %vm371_vm1, %v922_v31, %v921_v27  ;;  %v2473_v31 = vld [vmem:[#allocation6 + $0x18] sm:$0xff]  }
  0xda   : > { %v930_v34 = vrot.slane %v2990_v18, 2  ;;  %v917_v35 = vsel %vm383_vm5, %v916_v15, %v915_v23  ;;  %v925_v36 = vsel %vm374_vm2, %v924_v52, %v923_v45  ;;  %v932_v37 = vrot.slane %v2992_v19, 1 }
  0xdb   : > { %576 = vrot.lane.b32.xlu0 %v575_v33, %s2633_s14  ;;  %v919_v1 = vsel %vm386_vm6, %v918_v26, %v917_v35  ;;  %v927_v17 = vsel %vm377_vm3, %v926_v13, %v925_v36  ;;  %vm252_vm8 = vcmask 154624   ;;  %v2634_v39 = vmov 0   ;;  %v2474_v33 = vld [vmem:[#allocation6 + $0x20] sm:$0xff]  }
  0xdc   : > { %v929_v38 = vsel %vm380_vm4, %v928_v32, %v927_v17  ;;  %253 = vst.msk [vmem:[#allocation2] sm:$0xff] %vm252_vm8, %v2634_v39  ;;  %1004 = vmatprep.mubr.bf16.mxu0 %v2634_v39  ;;  %2468 = vset.pattern.permute.xlu1 %v2634_v39  ;;  %v920_v18 = vsel %vm389_vm7, %v2976_v28, %v919_v1  ;;  %vm254_vm9 = vcmask 703896   ;;  %vm615_vm10 = vcmask 138240  }
  0xdd   : > { %v931_v19 = vsel %vm383_vm5, %v930_v34, %v929_v38  ;;  %2469 = vset.pattern.permute.xlu0 %v2634_v39  ;;  %255 = vst.msk [vmem:[#allocation2 + $0x10] sm:$0xff] %vm254_vm9, %v2634_v39  ;;  %vm409_vm11 = vcmask 302232   ;;  %vm649_vm12 = vcmask 285832   ;;  %vm699_vm13 = vcmask 433432  }
  0xde   : > { %v933_v40 = vsel %vm386_vm6, %v932_v37, %v931_v19  ;;  %vm443_vm14 = vcmask 449832   ;;  %vm733_vm15 = vcmask 581032   ;;  %vm477_vm1 = vcmask 597432   ;;  %v2475_v37 = vld [vmem:[#allocation6 + $0x28] sm:$0xff]  }
  0xdf   : > { %v934_v48 = vsel %vm389_vm7, %v2994_v56, %v933_v40  ;;  %vm767_vm2 = vcmask 728632   ;;  %vm511_vm3 = vcmask 745032   ;;  %vm801_vm4 = vcmask 876232   ;;  %v2476_v40 = vld [vmem:[#allocation6 + $0x30] sm:$0xff]  }
  0xe0   : > { %v935_v49 = vpack.c.b16 %v934_v48, %v920_v18  ;;  %vm871_vm5 = vcmask 121856   ;;  %vm545_vm6 = vcmask 892632   ;;  %v2636_v43 = vmov 0.0  }
  0xe1   : > { %2261 = vmatprep.subr.bf16.mxu1 %v2636_v43  ;;  %vm835_vm7 = vcmask 1023832   ;;  %vm869_vm8 = vcmask 1048552   ;;  %vm905_vm9 = vcmask 269432  }
  0xe2   : > { %936 = vrot.lane.b32.xlu1 %v935_v49, %s2635_s20 }
  0xe4   : > { %v611_v54 = vpop.permute.xlu0 %610 }
  0xe5   : > { %616 = vst.msk [vmem:[#allocation2 + $0x8] sm:$0xff] %vm615_vm10, %v611_v54  ;;  %vm579_vm10 = vcmask 1040232  }
  0xee   : > { %v407_v28 = vpop.permute.xlu1 %406 }
  0xef   : > { %410 = vst.msk [vmem:[#allocation2] sm:$0xff] %vm409_vm11, %v407_v28  ;;  %vm613_vm11 = vcmask 1048568  }
  0xf6   : > { %v647_v55 = vpop.permute.xlu0 %646 }
  0xf7   : > { %650 = vst.msk [vmem:[#allocation2 + $0x8] sm:$0xff] %vm649_vm12, %v647_v55  ;;  %vm939_vm12 = vcmask 417032   ;;  %v2477_v55 = vld [vmem:[#allocation6 + $0x38] sm:$0xff]  }
  0xfd   : > { %v697_v59 = vpop.permute.xlu1 %696 }
  0xfe   : > { %700 = vst.msk [vmem:[#allocation2 + $0x8] sm:$0xff] %vm699_vm13, %v697_v59  ;;  %vm2637_vm13 = vmmov 0  }
  0xff   : > { %2263 = vmatprep.mubr.msk.bf16.mxu1 %vm2637_vm13, %v2636_v43 }
 0x104   : > { %v441_v56 = vpop.permute.xlu0 %440 }
 0x105   : > { %444 = vst.msk [vmem:[#allocation2] sm:$0xff] %vm443_vm14, %v441_v56  ;;  %vm963_vm14 = vcmask 1039360  }
 0x10c   : > { %v731_v60 = vpop.permute.xlu1 %730 }
 0x10d   : > { %734 = vst.msk [vmem:[#allocation2 + $0x8] sm:$0xff] %vm733_vm15, %v731_v60  ;;  %vm1162_vm15 = vcmask 1031168   ;;  %v2478_v60 = vld [vmem:[#allocation6 + $0x40] sm:$0xff]  }
 0x113   : > { %v475_v61 = vpop.permute.xlu0 %474 }
 0x114   : > { %478 = vst.msk [vmem:[#allocation2] sm:$0xff] %vm477_vm1, %v475_v61  ;;  %vm1275_vm1 = vcmask 900096   ;;  %v1941_v61 = vlaneseq }
 0x11a   : > { %v765_v16 = vpop.permute.xlu1 %764 }
 0x11b   : > { %768 = vst.msk [vmem:[#allocation2 + $0x8] sm:$0xff] %vm767_vm2, %v765_v16  ;;  %vm1388_vm2 = vcmask 891904   ;;  %v1942_v16 = vshrl.u32 %v1941_v61, 7 }
 0x122   : > { %v509_v29 = vpop.permute.xlu0 %508 }
 0x123   : > { %512 = vst.msk [vmem:[#allocation2] sm:$0xff] %vm511_vm3, %v509_v29  ;;  %vm1501_vm3 = vcmask 883712   ;;  %v1951_v29 = vsub.s32 2, %v1942_v16 }
 0x129   : > { %v799_v30 = vpop.permute.xlu1 %798 }
 0x12a   : > { %802 = vst.msk [vmem:[#allocation2 + $0x8] sm:$0xff] %vm801_vm4, %v799_v30  ;;  %vm1614_vm4 = vcmask 752640   ;;  %v1939_v30 = vld [vmem:[%s3652_s3] sm:$0x7] }
 0x130   : > { %v867_v62 = vpop.permute.xlu0 %866 }
 0x131   : > { %872 = vst.msk [vmem:[#allocation2 + $0x10] sm:$0xff] %vm871_vm5, %v867_v62  ;;  %vm1727_vm5 = vcmask 744448  }
 0x137   : > { %v543_v51 = vpop.permute.xlu1 %542 }
 0x138   : > { %546 = vst.msk [vmem:[#allocation2] sm:$0xff] %vm545_vm6, %v543_v51  ;;  %vm1840_vm6 = vcmask 736256   ;;  %v1947_v51 = vsub.s32 1, %v1942_v16 }
 0x13f   : > { %v833_v44 = vpop.permute.xlu0 %832 }
 0x140   : > { %836 = vst.msk [vmem:[#allocation2 + $0x8] sm:$0xff] %vm835_vm7, %v833_v44 }
 0x141   : > { %870 = vst.msk [vmem:[#allocation2 + $0x8] sm:$0xff] %vm869_vm8, %v867_v62  ;;  %v1943_v62 = vsub.s32 0, %v1942_v16 }
 0x143   : > { %v3541_v44 = vrot.slane %v1939_v30, %v1943_v62 }
 0x146   : > { %v903_v42 = vpop.permute.xlu1 %902 }
 0x147   : > { %906 = vst.msk [vmem:[#allocation2 + $0x10] sm:$0xff] %vm905_vm9, %v903_v42 }
 0x148   : > { %v944_v50 = vld [vmem:[#allocation2 + $0x8] sm:$0xff] }
 0x149   : > { %959 = vrot.lane.b32.xlu0 %v944_v50, %s2619_s21 }
 0x14d   : > { %v577_v57 = vpop.permute.xlu0 %576 }
 0x14e   : > { %580 = vst.msk [vmem:[#allocation2] sm:$0xff] %vm579_vm10, %v577_v57  ;;  %vm2078_vm10 = vcmask 257024  }
 0x14f   : > { %614 = vst.msk [vmem:[#allocation2] sm:$0xff] %vm613_vm11, %v611_v54 }
 0x154   : > { %v937_v3 = vpop.permute.xlu1 %936 }
 0x155   : > { %940 = vst.msk [vmem:[#allocation2 + $0x10] sm:$0xff] %vm939_vm12, %v937_v3 }
 0x156   : > { %v943_v20 = vld [vmem:[#allocation2] sm:$0xff] }
 0x157   : > { %957 = vrot.lane.b32.xlu0 %v943_v20, %s2619_s21 }
 0x15c   : > { %v945_v21 = vld [vmem:[#allocation2 + $0x10] sm:$0xff] }
 0x15d   : > { %961 = vrot.lane.b32.xlu1 %v945_v21, %s2619_s21  ;;  %1160 = vrot.lane.b32.xlu0 %v945_v21, %s2638_s23  ;;  %s2642_s21 = smov 90  }
 0x161   : > { %1158 = vrot.lane.b32.xlu1 %v944_v50, %s2638_s23  ;;  %1271 = vrot.lane.b32.xlu0 %v944_v50, %s2639_s9 }
 0x165   : > { %1156 = vrot.lane.b32.xlu1 %v943_v20, %s2638_s23  ;;  %1269 = vrot.lane.b32.xlu0 %v943_v20, %s2639_s9 }
 0x169   : > { %1273 = vrot.lane.b32.xlu1 %v945_v21, %s2639_s9  ;;  %1386 = vrot.lane.b32.xlu0 %v945_v21, %s2633_s14 }
 0x16d   : > { %1384 = vrot.lane.b32.xlu1 %v944_v50, %s2633_s14  ;;  %1497 = vrot.lane.b32.xlu0 %v944_v50, %s2640_s28 }
 0x171   : > { %1382 = vrot.lane.b32.xlu1 %v943_v20, %s2633_s14  ;;  %1495 = vrot.lane.b32.xlu0 %v943_v20, %s2640_s28  ;;  %s245_s14 = scalar_lea.vmem [#allocation8], %s2379_s11 }
 0x172   : > { %s2096_s20 = sshll.u32 %s245_s14, 4  ;;  %s3604_s20 = int_to_ptr.vmem [resolvable:$true] %s2096_s20 }
 0x175   : > { %1499 = vrot.lane.b32.xlu1 %v945_v21, %s2640_s28  ;;  %1612 = vrot.lane.b32.xlu0 %v945_v21, %s2641_s29  ;;  %s3602_s28 = scalar_lea.hbm %s3653_s4, %s2380_s13 }
 0x179   : > { %1610 = vrot.lane.b32.xlu1 %v944_v50, %s2641_s29  ;;  %1723 = vrot.lane.b32.xlu0 %v944_v50, %s2630_s25 }
 0x17d   : > { %1608 = vrot.lane.b32.xlu1 %v943_v20, %s2641_s29  ;;  %1721 = vrot.lane.b32.xlu0 %v943_v20, %s2630_s25  ;;  %s2541_s29 = scalar_lea.vmem %s3604_s20, 384 }
 0x17e   : > { %p2542_p6 = scmp.ne.s32.totalorder %s3604_s20, %s2541_s29 }
 0x180   : > { %p2543_p8 = pnand %p2542_p6, %p2762_p12 }
 0x181   : > { %1725 = vrot.lane.b32.xlu1 %v945_v21, %s2630_s25  ;;  %1838 = vrot.lane.b32.xlu0 %v945_v21, %s2642_s21  ;;  %s250_s25 = scalar_lea.vmem %s3651_s2, %s2238_s7 }
 0x182   : > { %p2544_p10 = pneg %p2543_p8 }
 0x185   : > { %1836 = vrot.lane.b32.xlu1 %v944_v50, %s2642_s21 }
 0x189   : > { %1834 = vrot.lane.b32.xlu1 %v943_v20, %s2642_s21  ;;  %s2643_s21 = smov [#allocation8]  }
 0x18a   : > { %s2545_s10 = sshll.u32 %s2643_s21, 4  ;;  %s2546_s10 = int_to_ptr.vmem [resolvable:$false] %s2545_s10 }
 0x18b   : > { %s2547_s6 = scalar_lea.vmem %s2546_s10, 768  ;;  %p2548_p13 = scmp.lt.s32.totalorder %s3604_s20, %s2546_s10 }
 0x18c   : > { %p2549_p3 = scmp.lt.s32.totalorder %s2547_s6, %s2541_s29 }
 0x18e   : > { %p2550_p7 = por %p2549_p3, %p2548_p13 }
 0x190   : > { %p2551_p9 = pnand %p2550_p7, %p2544_p10 }
 0x1bb   : > { %v960_v4 = vpop.permute.xlu0 %959 }
 0x1c9   : > { %v958_v7 = vpop.permute.xlu0 %957 }
 0x1ca   : > { %v964_v0 = vsel %vm963_vm14, %v958_v7, %v960_v4 }
 0x1cf   : > { %v962_v63 = vpop.permute.xlu1 %961  ;;  %v1161_v24 = vpop.permute.xlu0 %1160 }
 0x1d0   : > { %2262 = vmatpush3.bf16.msra.mxu1 %v962_v63  ;;  %v965_v10 = vsel %vm963_vm14, %v960_v4, %v962_v63 }
 0x1d1   : > { %972 = vmatprep.subr.bf16.mxu0 %v965_v10  ;;  %2267 = vmatprep.subr.bf16.mxu1 %v2636_v43 }
 0x1d2   : > { %973 = vmatpush1.bf16.msra.mxu0 %v964_v0 }
 0x1d3   : > { %2264 = vmatmul.mubr.msk.bf16.vlgmr.msra.gmra.mrb[0].mxu1 %vm304_vm0, %v2470_v8  ;;  %v1159_v2 = vpop.permute.xlu1 %1158  ;;  %1064 = vmatprep.subr.bf16.mxu0 %v944_v50  ;;  %v1272_v5 = vpop.permute.xlu0 %1271 }
 0x1d4   : > { %2268 = vmatpush3.bf16.msra.mxu1 %v945_v21  ;;  %v1164_v11 = vsel %vm1162_vm15, %v1159_v2, %v1161_v24  ;;  %2269 = vmatprep.mubr.msk.bf16.mxu1 %vm2637_vm13, %v2636_v43 }
 0x1d5   : > { %2204 = vmatmul.mubr.msk.bf16.vlgmr.msra.gmra.mrb[0].mxu0 %vm304_vm0, %v2470_v8  ;;  %2273 = vmatprep.subr.bf16.mxu1 %v2636_v43 }
 0x1d6   : > { %1065 = vmatpush1.bf16.msra.mxu0 %v943_v20  ;;  %1096 = vmatprep.mubr.bf16.mxu0 %v2634_v39 }
 0x1d7   : > { %1171 = vmatprep.subr.bf16.mxu0 %v1164_v11  ;;  %v1157_v12 = vpop.permute.xlu1 %1156  ;;  %v1270_v15 = vpop.permute.xlu0 %1269 }
 0x1d8   : > { %v1163_v9 = vsel %vm1162_vm15, %v1157_v12, %v1159_v2  ;;  %v1276_v27 = vsel %vm1275_vm1, %v1270_v15, %v1272_v5 }
 0x1db   : > { %v1274_v14 = vpop.permute.xlu1 %1273  ;;  %v1387_v26 = vpop.permute.xlu0 %1386 }
 0x1dc   : > { %v1277_v6 = vsel %vm1275_vm1, %v1272_v5, %v1274_v14 }
 0x1df   : > { %2270 = vmatmul.mubr.msk.bf16.vlgmr.msra.gmra.mrb[0].mxu1 %vm304_vm0, %v2471_v58  ;;  %v1385_v25 = vpop.permute.xlu1 %1384  ;;  %v1498_v52 = vpop.permute.xlu0 %1497 }
 0x1e0   : > { %2274 = vmatpush3.bf16.msra.mxu1 %v1161_v24  ;;  %2275 = vmatprep.mubr.msk.bf16.mxu1 %vm2637_vm13, %v2636_v43  ;;  %v1390_v46 = vsel %vm1388_vm2, %v1385_v25, %v1387_v26 }
 0x1e1   : > { %2207 = vmatmul.mubr.msk.bf16.vlgmr.msra.gmra.mrb[0].mxu0 %vm304_vm0, %v2471_v58  ;;  %2279 = vmatprep.subr.bf16.mxu1 %v2636_v43 }
 0x1e2   : > { %1172 = vmatpush1.bf16.msra.mxu0 %v1163_v9  ;;  %1203 = vmatprep.mubr.bf16.mxu0 %v2634_v39 }
 0x1e3   : > { %1284 = vmatprep.subr.bf16.mxu0 %v1277_v6  ;;  %v1383_v47 = vpop.permute.xlu1 %1382  ;;  %v1496_v32 = vpop.permute.xlu0 %1495 }
 0x1e4   : > { %v1389_v22 = vsel %vm1388_vm2, %v1383_v47, %v1385_v25  ;;  %v1502_v34 = vsel %vm1501_vm3, %v1496_v32, %v1498_v52  ;;  %v2016_v32 = vld [vmem:[%s250_s25 + $0x8] sm:$0xff] }
 0x1e7   : > { %v1500_v53 = vpop.permute.xlu1 %1499  ;;  %v1613_v45 = vpop.permute.xlu0 %1612 }
 0x1e8   : > { %v1503_v13 = vsel %vm1501_vm3, %v1498_v52, %v1500_v53 }
 0x1eb   : > { %2276 = vmatmul.mubr.msk.bf16.vlgmr.msra.gmra.mrb[0].mxu1 %vm304_vm0, %v2472_v41  ;;  %v1611_v23 = vpop.permute.xlu1 %1610  ;;  %v1724_v1 = vpop.permute.xlu0 %1723 }
 0x1ec   : > { %2280 = vmatpush3.bf16.msra.mxu1 %v1274_v14  ;;  %2281 = vmatprep.mubr.msk.bf16.mxu1 %vm2637_vm13, %v2636_v43  ;;  %v1616_v35 = vsel %vm1614_vm4, %v1611_v23, %v1613_v45 }
 0x1ed   : > { %2210 = vmatmul.mubr.msk.bf16.vlgmr.msra.gmra.mrb[0].mxu0 %vm304_vm0, %v2472_v41  ;;  %2285 = vmatprep.subr.bf16.mxu1 %v2636_v43 }
 0x1ee   : > { %1285 = vmatpush1.bf16.msra.mxu0 %v1276_v27  ;;  %1316 = vmatprep.mubr.bf16.mxu0 %v2634_v39 }
 0x1ef   : > { %1397 = vmatprep.subr.bf16.mxu0 %v1390_v46  ;;  %v1609_v36 = vpop.permute.xlu1 %1608  ;;  %v1722_v19 = vpop.permute.xlu0 %1721 }
 0x1f0   : > { %v1615_v38 = vsel %vm1614_vm4, %v1609_v36, %v1611_v23  ;;  %v1728_v54 = vsel %vm1727_vm5, %v1722_v19, %v1724_v1 }
 0x1f3   : > { %v1726_v17 = vpop.permute.xlu1 %1725  ;;  %v1839_v49 = vpop.permute.xlu0 %1838 }
 0x1f4   : > { %v1729_v18 = vsel %vm1727_vm5, %v1724_v1, %v1726_v17 }
 0x1f7   : > { %2282 = vmatmul.mubr.msk.bf16.vlgmr.msra.gmra.mrb[0].mxu1 %vm304_vm0, %v2473_v31  ;;  %v1837_v48 = vpop.permute.xlu1 %1836 }
 0x1f8   : > { %2286 = vmatpush3.bf16.msra.mxu1 %v1387_v26  ;;  %2287 = vmatprep.mubr.msk.bf16.mxu1 %vm2637_vm13, %v2636_v43  ;;  %v1842_v28 = vsel %vm1840_vm6, %v1837_v48, %v1839_v49 }
 0x1f9   : > { %2213 = vmatmul.mubr.msk.bf16.vlgmr.msra.gmra.mrb[0].mxu0 %vm304_vm0, %v2473_v31  ;;  %2291 = vmatprep.subr.bf16.mxu1 %v2636_v43 }
 0x1fa   : > { %1398 = vmatpush1.bf16.msra.mxu0 %v1389_v22  ;;  %1429 = vmatprep.mubr.bf16.mxu0 %v2634_v39 }
 0x1fb   : > { %1510 = vmatprep.subr.bf16.mxu0 %v1503_v13  ;;  %v1835_v59 = vpop.permute.xlu1 %1834  ;;  %v2015_v13 = vld [vmem:[%s250_s25] sm:$0xff] }
 0x1fc   : > { %v1841_v56 = vsel %vm1840_vm6, %v1835_v59, %v1837_v48 }
 0x203   : > { %2288 = vmatmul.mubr.msk.bf16.vlgmr.msra.gmra.mrb[0].mxu1 %vm304_vm0, %v2474_v33 }
 0x204   : > { %2292 = vmatpush3.bf16.msra.mxu1 %v1500_v53  ;;  %2293 = vmatprep.mubr.msk.bf16.mxu1 %vm2637_vm13, %v2636_v43 }
 0x205   : > { %2216 = vmatmul.mubr.msk.bf16.vlgmr.msra.gmra.mrb[0].mxu0 %vm304_vm0, %v2474_v33  ;;  %2297 = vmatprep.subr.bf16.mxu1 %v2636_v43 }
 0x206   : > { %1511 = vmatpush1.bf16.msra.mxu0 %v1502_v34  ;;  %1542 = vmatprep.mubr.bf16.mxu0 %v2634_v39 }
 0x207   : > { %1623 = vmatprep.subr.bf16.mxu0 %v1616_v35 }
 0x20f   : > { %2294 = vmatmul.mubr.msk.bf16.vlgmr.msra.gmra.mrb[0].mxu1 %vm304_vm0, %v2475_v37 }
 0x210   : > { %2298 = vmatpush3.bf16.msra.mxu1 %v1613_v45  ;;  %2299 = vmatprep.mubr.msk.bf16.mxu1 %vm2637_vm13, %v2636_v43 }
 0x211   : > { %2219 = vmatmul.mubr.msk.bf16.vlgmr.msra.gmra.mrb[0].mxu0 %vm304_vm0, %v2475_v37  ;;  %2303 = vmatprep.subr.bf16.mxu1 %v2636_v43 }
 0x212   : > { %1624 = vmatpush1.bf16.msra.mxu0 %v1615_v38  ;;  %1655 = vmatprep.mubr.bf16.mxu0 %v2634_v39 }
 0x213   : > { %1736 = vmatprep.subr.bf16.mxu0 %v1729_v18 }
 0x21b   : > { %2300 = vmatmul.mubr.msk.bf16.vlgmr.msra.gmra.mrb[0].mxu1 %vm304_vm0, %v2476_v40 }
 0x21c   : > { %2304 = vmatpush3.bf16.msra.mxu1 %v1726_v17  ;;  %2305 = vmatprep.mubr.msk.bf16.mxu1 %vm2637_vm13, %v2636_v43 }
 0x21d   : > { %2222 = vmatmul.mubr.msk.bf16.vlgmr.msra.gmra.mrb[0].mxu0 %vm304_vm0, %v2476_v40  ;;  %2309 = vmatprep.subr.bf16.mxu1 %v2636_v43 }
 0x21e   : > { %1737 = vmatpush1.bf16.msra.mxu0 %v1728_v54  ;;  %1768 = vmatprep.mubr.bf16.mxu0 %v2634_v39 }
 0x21f   : > { %1849 = vmatprep.subr.bf16.mxu0 %v1842_v28 }
 0x227   : > { %2306 = vmatmul.mubr.msk.bf16.vlgmr.msra.gmra.mrb[0].mxu1 %vm304_vm0, %v2477_v55 }
 0x228   : > { %2310 = vmatpush3.bf16.msra.mxu1 %v1839_v49  ;;  %2311 = vmatprep.mubr.msk.bf16.mxu1 %vm2637_vm13, %v2636_v43  ;;  %v3539_v43 = vrot.slane %v1939_v30, %v1951_v29 }
 0x229   : > { %2225 = vmatmul.mubr.msk.bf16.vlgmr.msra.gmra.mrb[0].mxu0 %vm304_vm0, %v2477_v55 }
 0x22a   : > { %1850 = vmatpush1.bf16.msra.mxu0 %v1841_v56  ;;  %1881 = vmatprep.mubr.bf16.mxu0 %v2634_v39  ;;  %v3545_v39 = vrot.slane %v1939_v30, %v1947_v51 }
 0x233   : > { %2312 = vmatmul.mubr.msk.bf16.vlgmr.msra.gmra.mrb[0].mxu1 %vm304_vm0, %v2478_v60 }
 0x235   : > { %2228 = vmatmul.mubr.msk.bf16.vlgmr.msra.gmra.mrb[0].mxu0 %vm304_vm0, %v2478_v60  ;;  %vm1963_vm0 = vcmask 261120  }
 0x306   : > { %v3543_v42 = vpop.f32.mrb[0].mxu1 }
 0x307   : > { %v1958_v50 = vmul.f32 %v3539_v43, %v3543_v42  ;;  %v2313_v57 = vpop.f32.mrb[1].mxu1 }
 0x308   : > { %v3549_v3 = vpop.f32.mrb[0].mxu0  ;;  %v3551_v20 = vpop.f32.mrb[2].mxu1 }
 0x309   : > { %v1956_v21 = vmul.f32 %v3541_v44, %v3549_v3  ;;  %v1961_v4 = vmul.f32 %v3539_v43, %v3551_v20  ;;  %v3557_v7 = vpop.f32.mrb[1].mxu0  ;;  %v2314_v63 = vpop.f32.mrb[3].mxu1  ;;  %v1977_v10 = vmul.f32 %v1958_v50, %v3543_v42  ;;  %v1964_v6 = vsel %vm1963_vm0, %v1958_v50, 0.0 }
 0x30a   : > { %v1957_v0 = vmul.f32 %v3545_v39, %v3557_v7  ;;  %v3561_v8 = vpop.f32.mrb[2].mxu0 }
 0x30b   : > { %v1975_v24 = vmul.f32 %v1956_v21, %v3549_v3  ;;  %v1959_v2 = vmul.f32 %v3541_v44, %v3561_v8  ;;  %v3567_v11 = vpop.f32.mrb[3].mxu0  ;;  %v1980_v14 = vmul.f32 %v1961_v4, %v3551_v20  ;;  %v1969_v27 = vsel %vm1963_vm0, %v1961_v4, 0.0 }
 0x30c   : > { %v1976_v12 = vmul.f32 %v1957_v0, %v3557_v7  ;;  %v1960_v58 = vmul.f32 %v3545_v39, %v3567_v11  ;;  %v1962_v5 = vadd.f32 %v1957_v0, %v1956_v21  ;;  %v1982_v46 = vsel %vm1963_vm0, %v1977_v10, 0.0 }
 0x30d   : > { %v1978_v9 = vmul.f32 %v1959_v2, %v3561_v8  ;;  %v1987_v53 = vsel %vm1963_vm0, %v1980_v14, 0.0 }
 0x30e   : > { %v1979_v15 = vmul.f32 %v1960_v58, %v3567_v11  ;;  %v1965_v41 = vadd.f32 %v1964_v6, %v1962_v5  ;;  %v1968_v25 = vadd.f32 %v1960_v58, %v1959_v2  ;;  %v1981_v26 = vadd.f32 %v1976_v12, %v1975_v24 }
 0x310   : > { %1966 = vadd.xlane.f32.xlu0 %v1965_v41  ;;  %v1970_v47 = vadd.f32 %v1969_v27, %v1968_v25  ;;  %v1983_v31 = vadd.f32 %v1982_v46, %v1981_v26  ;;  %v1986_v52 = vadd.f32 %v1979_v15, %v1978_v9 }
 0x312   : > { %1971 = vadd.xlane.f32.xlu1 %v1970_v47  ;;  %v1988_v22 = vadd.f32 %v1987_v53, %v1986_v52 }
 0x314   : > { %1984 = vadd.xlane.f32.xlu0 %v1983_v31 }
 0x318   : > { %1989 = vadd.xlane.f32.xlu0 %v1988_v22 }
 0x323   : > { %2019 = vperm.xlu1 %2468, %v2015_v13  }
 0x32e   : > { %2024 = vperm.xlu0 %2469, %v2016_v32  }
 0x39d   : > { %v1967_v33 = vpop.xlane.xlu0 %1966 }
 0x39e   : > { %v1973_v23 = vmul.f32 0.00390625, %v1967_v33 }
 0x39f   : > { %v1972_v45 = vpop.xlane.xlu1 %1971 }
 0x3a0   : > { %v1974_v35 = vmul.f32 0.00390625, %v1972_v45  ;;  %v1993_v36 = vmul.f32 %v1973_v23, %v1973_v23  ;;  %v1999_v28 = vsub.f32 %v3549_v3, %v1973_v23  ;;  %v2000_v55 = vsub.f32 %v3557_v7, %v1973_v23 }
 0x3a1   : > { %v1985_v34 = vpop.xlane.xlu0 %1984  ;;  %v2001_v59 = vsub.f32 %v3543_v42, %v1973_v23 }
 0x3a2   : > { %v1991_v37 = vmul.f32 0.00390625, %v1985_v34  ;;  %v1994_v19 = vmul.f32 %v1974_v35, %v1974_v35  ;;  %v2002_v57 = vsub.f32 %v3561_v8, %v1974_v35  ;;  %v2003_v21 = vsub.f32 %v3567_v11, %v1974_v35 }
 0x3a3   : > { %v2020_v60 = vpop.permute.xlu1 %2019  ;;  %v2004_v3 = vsub.f32 %v3551_v20, %v1974_v35 }
 0x3a4   : > { %v1995_v1 = vsub.f32 %v1991_v37, %v1993_v36 }
 0x3a5   : > { %v1990_v17 = vpop.xlane.xlu0 %1989 }
 0x3a6   : > { %v1997_v38 = vmax.f32 %v1995_v1, 0.0  ;;  %v1992_v18 = vmul.f32 0.00390625, %v1990_v17 }
 0x3a8   : > { %v2005_v40 = vadd.f32 1e-05, %v1997_v38  ;;  %v1996_v48 = vsub.f32 %v1992_v18, %v1994_v19 }
 0x3aa   : > { %2479 = vrsqrt.f32 %v2005_v40  ;;  %v1998_v49 = vmax.f32 %v1996_v48, 0.0 }
 0x3ac   : > { %v2006_v54 = vadd.f32 1e-05, %v1998_v49 }
 0x3ad   : > { %v2025_v4 = vpop.permute.xlu0 %2024 }
 0x3ae   : > { %2481 = vrsqrt.f32 %v2006_v54 }
 0x3b4   : > { %v2480_v56 = vpop.eup %2479 }
 0x3b5   : > { %v2009_v61 = vmul.f32 %v2480_v56, %v1999_v28  ;;  %v2010_v16 = vmul.f32 %v2480_v56, %v2000_v55  ;;  %v2011_v29 = vmul.f32 %v2480_v56, %v2001_v59 }
 0x3b7   : > { %v2027_v30 = vadd.f32 %v2020_v60, %v2009_v61  ;;  %v2028_v62 = vadd.f32 %v2020_v60, %v2010_v16  ;;  %v2029_v51 = vadd.f32 %v2020_v60, %v2011_v29 }
 0x3b8   : > { %v2482_v50 = vpop.eup %2481 }
 0x3b9   : > { %vm2033_vm7 = vcmp.gt.f32.partialorder %v2027_v30, 0.0  ;;  %vm2034_vm8 = vcmp.gt.f32.partialorder %v2028_v62, 0.0  ;;  %vm2035_vm9 = vcmp.gt.f32.partialorder %v2029_v51, 0.0  ;;  %v2039_v42 = vmul.f32 0.01, %v2027_v30 }
 0x3ba   : > { %v2040_v7 = vmul.f32 0.01, %v2028_v62  ;;  %v2041_v63 = vmul.f32 0.01, %v2029_v51  ;;  %v2012_v0 = vmul.f32 %v2482_v50, %v2002_v57  ;;  %v2013_v10 = vmul.f32 %v2482_v50, %v2003_v21 }
 0x3bb   : > { %v2045_v24 = vsel %vm2033_vm7, %v2027_v30, %v2039_v42  ;;  %v2014_v2 = vmul.f32 %v2482_v50, %v2004_v3 }
 0x3bc   : > { %v2046_v12 = vsel %vm2034_vm8, %v2028_v62, %v2040_v7  ;;  %v2047_v58 = vsel %vm2035_vm9, %v2029_v51, %v2041_v63  ;;  %v2051_v8 = vmul.f32 %v2045_v24, %v3541_v44  ;;  %v2030_v11 = vadd.f32 %v2025_v4, %v2012_v0 }
 0x3bd   : > { %v2052_v20 = vmul.f32 %v2046_v12, %v3545_v39  ;;  %v2053_v5 = vmul.f32 %v2047_v58, %v3539_v43  ;;  %v2031_v14 = vadd.f32 %v2025_v4, %v2013_v10  ;;  %v2032_v9 = vadd.f32 %v2025_v4, %v2014_v2 }
 0x3be   : > { %vm2036_vm11 = vcmp.gt.f32.partialorder %v2030_v11, 0.0  ;;  %v2042_v6 = vmul.f32 0.01, %v2030_v11 }
 0x3bf   : > { %v2239_v15 = vpack.c.bf16 %v2052_v20, %v2051_v8  ;;  %v2240_v41 = vpack.c.bf16 %v2053_v5, %v2053_v5  ;;  %vm2037_vm12 = vcmp.gt.f32.partialorder %v2031_v14, 0.0  ;;  %vm2038_vm13 = vcmp.gt.f32.partialorder %v2032_v9, 0.0 }
 0x3c0   : > { %v2043_v25 = vmul.f32 0.01, %v2031_v14  ;;  %v2044_v26 = vmul.f32 0.01, %v2032_v9  ;;  %v2048_v27 = vsel %vm2036_vm11, %v2030_v11, %v2042_v6 }
 0x3c1   : > { %2077 = vst [vmem:[%s245_s14] sm:$0xff] %v2239_v15  ;;  %2079 = vst.msk [vmem:[%s245_s14 + $0x8] sm:$0xf] %vm2078_vm10, %v2240_v41  ;;  %v2054_v46 = vmul.f32 %v2048_v27, %v3541_v44 }
 0x3c2   : > { %v2049_v47 = vsel %vm2037_vm12, %v2031_v14, %v2043_v25  ;;  %v2050_v31 = vsel %vm2038_vm13, %v2032_v9, %v2044_v26 }
 0x3c3   : > { %v2055_v52 = vmul.f32 %v2049_v47, %v3545_v39  ;;  %v2056_v53 = vmul.f32 %v2050_v31, %v3539_v43 }
 0x3c5   : > { %v2241_v22 = vpack.c.bf16 %v2055_v52, %v2054_v46  ;;  %v2242_v13 = vpack.c.bf16 %v2056_v53, %v2056_v53 }
 0x3c7   : > { %2080 = vst [vmem:[%s245_s14 + $0xc] sm:$0xff] %v2241_v22  ;;  %2081 = vst.msk [vmem:[%s245_s14 + $0x14] sm:$0xf] %vm2078_vm10, %v2242_v13 }
 0x3c8   : > { %2554 = shalt.err (!%p2551_p9)
}
 0x3c9   : > { %s2555_s5 = scalar_lea.hbm %s3602_s28, 384  ;;  %s2559_s8 = scalar_lea.hbm %s3653_s4, 768 }
 0x3ca   : > { %p2556_p2 = scmp.ne.s32.totalorder %s3602_s28, %s2555_s5  ;;  %p2560_p11 = scmp.lt.u32.totalorder %s3602_s28, %s3653_s4 }
 0x3cb   : > { %p2561_p1 = scmp.lt.u32.totalorder %s2559_s8, %s2555_s5  ;;  %p2563_p6 = scmp.lt.u32.totalorder %s2555_s5, %s3602_s28 }
 0x3cc   : > { %p2557_p0 = pnand %p2556_p2, %p2762_p12 }
 0x3cd   : > { %p2562_p4 = por %p2561_p1, %p2560_p11 }
 0x3ce   : > { %p2558_p5 = pneg %p2557_p0 }
 0x3cf   : > { %p2564_p8 = por %p2563_p6, %p2562_p4 }
 0x3d1   : > { %p2565_p10 = pnand %p2564_p8, %p2558_p5 }
 0x3d3   : > { %2568 = shalt.err (!%p2565_p10)
}
 0x3d4   : > { %s2644_s13 = smov 192   ;;  %s2645_s14 = smov 12  }
 0x3d5   : > { %2387 = dma.vmem_to_hbm [thread:$0]  (%p2762_p12), %s3604_s20, 384, %s3602_s28, %s2083_s19, %s2644_s13, %s2644_s13, %s2645_s14  }
 0x3d6 PF: > { %s2111_s23 = sand.u32 1, %s2599_s15   ;;  %p3668_p13 = scmp.ne.s32.totalorder %s3658_s22, 0 }
 0x3d7   : > { %p3669_p3 = scmp.ge.s32.totalorder %s2611_s18, 2  ;;  %s2112_s9 = scalar_lea.sflag [#allocation5], %s2111_s23 }
 0x3d9   : > { %p2398_p7 = pnand %p3669_p3, %p3668_p13 }
 0x3db   : > { %2594 = dma.done.wait (!%p2398_p7), %s2112_s9, 384  }
 0x3dc   : > { %2596 = vsyncadd (!%p2398_p7), %s2112_s9, 4294966912  ;;  %p18_p9 = scmp.ge.s32.totalorder %s2727_s27, 4   ;;  %s3670_s15 = smov %s2603_s16 }
 0x3dd   : > { %s3671_s16 = smov %s2607_s17  ;;  %s3672_s17 = smov %s2758_s24 }
 0x3de   : > { %s3673_s18 = smov %s2727_s27  ;;  %20 = sbr.rel (!%p18_p9) target bundleno = 6 (0x6), region = 96 }
 0x3e5   :  { %2117 = vsyncpa [#allocation4], 1 }
 0x3e6   :  { %2119 = vsyncpa [#allocation4 + $0x1], 1 }
 0x3e7   :  { %2120 = vsyncpa [#allocation7], 1 }
 0x3e8   :  { %2121 = vsyncpa [#allocation5], 1 }
 0x3e9   :  { %2123 = vsyncpa [#allocation5 + $0x1], 1 }

</bundles_post_ra>
